<compile_context>
chip_gen: v5e
topology: v5e:2x2
jax: 0.10.0
libtpu: 0.0.40
codegen_flags: <defaults>
</compile_context>

<pallas_src>
import jax
import jax.numpy as jnp
from jax.experimental import pallas as pl
from jax.experimental.pallas import tpu as pltpu

DEPTH = 3          # Sub_Graph default depth
LN_EPS = 1e-5      # torch.nn.LayerNorm default eps


def _sub_graph_kernel(x_ref, len_ref, w1_ref, b1_ref, g_ref, be_ref,
                      w2_ref, b2_ref, out_ref):
    TB, L, H = x_ref.shape
    H2 = H // 2
    cdt = x_ref.dtype                     # MXU operand dtype (f32 or bf16)

    # Additive column mask rebuilt in-kernel: 0 on valid rows, -10000 on pads.
    lens = len_ref[...]                                          # [TB, 1] int32
    iota = jax.lax.broadcasted_iota(jnp.int32, (TB, L), 1)       # [TB, L]
    negm = jnp.where(iota >= lens, -10000.0, 0.0)
    negm = negm.astype(jnp.float32)[:, :, None]                  # [TB, L, 1]

    enc_flat = None                       # [TB*L, H2] current layer's encoded states (f32)
    mx = None                             # [TB, H2]   clamped masked max
    raw = None                            # [TB, H2]   un-clamped masked max (last layer)

    for l in range(DEPTH):                # static unroll over depth
        w1 = w1_ref[l]                    # [H, H]   (cdt)
        b1 = b1_ref[l]                    # [1, H]   (f32)
        g = g_ref[l]                      # [1, H]   (f32)
        be = be_ref[l]                    # [1, H]   (f32)
        w2 = w2_ref[l]                    # [H, H2]  (cdt)
        b2 = b2_ref[l]                    # [1, H2]  (f32)

        if l == 0:
            xf = x_ref[...].reshape(TB * L, H)
            h = jnp.dot(xf, w1, preferred_element_type=jnp.float32) + b1
        else:
            # x_l = [enc | broadcast(mx)]  =>  x_l @ W1 = enc @ W1[:H2] + mx @ W1[H2:]
            h_enc = jnp.dot(enc_flat.astype(cdt), w1[:H2, :],
                            preferred_element_type=jnp.float32)        # [TB*L, H]
            h_mx = jnp.dot(mx.astype(cdt), w1[H2:, :],
                           preferred_element_type=jnp.float32)         # [TB, H]
            h = (h_enc.reshape(TB, L, H) + h_mx[:, None, :] + b1)
            h = h.reshape(TB * L, H)

        # LayerNorm (two-pass stats, all f32) + ReLU   (dropout p=0 -> identity)
        mu = jnp.mean(h, axis=-1, keepdims=True)
        d = h - mu
        var = jnp.mean(d * d, axis=-1, keepdims=True)
        hn = d * jax.lax.rsqrt(var + LN_EPS) * g + be
        hr = jnp.maximum(hn, 0.0)

        # MLP.layer2
        enc_flat = jnp.dot(hr.astype(cdt), w2,
                           preferred_element_type=jnp.float32) + b2    # [TB*L, H2]
        enc = enc_flat.reshape(TB, L, H2)

        # masked max over vectors; clamp at zero for use in the next layer
        raw = jnp.max(enc + negm, axis=1)          # [TB, H2]
        mx = jnp.maximum(raw, 0.0)

    # Final masked max over [enc | broadcast(mx)]:
    #   first half  = raw masked max of the last enc (NOT clamped),
    #   second half = mx itself (every real polyline has >= 1 valid row).
    out_ref[...] = jnp.concatenate([raw, mx], axis=-1)   # [TB, H]


def _choose_batch_tile(B, L, H, itemsize):
    """Pick polylines-per-grid-step.

    Big enough to amortize per-step overhead and fatten the MXU M dim (TB*L);
    small enough that the double-buffered input block plus the unrolled
    3-layer f32 intermediates stay well inside the smallest scoped-VMEM budget
    (v5e 16 MiB default, v7x 64 MiB physical).  Keep >= 2 grid steps when B
    allows so the "parallel" axis can shard across v7x's two TensorCores.
    """
    budget = 10 * 1024 * 1024
    per_poly = L * H * (2 * itemsize + 6 * 4)   # dbl-buffered input + ~6 f32 [L,H] temps
    tb = budget // max(per_poly, 1)
    tb = max(8, min(512, (tb // 8) * 8))
    b8 = ((B + 7) // 8) * 8
    if b8 >= 16:
        tb = min(tb, ((b8 // 2 + 7) // 8) * 8)
    return max(8, min(tb, b8))


def sub_graph_forward(hidden_states, lengths, params, batch_tile=None,
                      compute_dtype=jnp.float32):
    """hidden_states: [B, L, H] padded polylines; lengths: per-polyline counts.

    compute_dtype: dtype of the MXU operands (jnp.float32 or jnp.bfloat16);
    all LayerNorm / mask / max math stays in f32 either way.
    """
    B, L, H = hidden_states.shape
    if B == 0:
        return jnp.zeros((0, H), jnp.float32)
    H2 = H // 2
    w1, b1, g, be, w2, b2 = params

    lengths = jnp.asarray(lengths, jnp.int32)
    itemsize = jnp.dtype(compute_dtype).itemsize

    # Pad L to the sublane packing so in-kernel [TB,L,H] <-> [TB*L,H] reshapes
    # are free (8 rows/sublane-group for f32, 16 for bf16).  Padded rows are
    # zero and masked out via `lengths`.
    row_align = 8 if itemsize == 4 else 16
    L_pad = ((L + row_align - 1) // row_align) * row_align
    if L_pad != L:
        hidden_states = jnp.pad(hidden_states, ((0, 0), (0, L_pad - L), (0, 0)))
        L = L_pad

    tb = batch_tile if batch_tile is not None else _choose_batch_tile(B, L, H, itemsize)
    tb = max(8, (tb // 8) * 8)

    B_pad = ((B + tb - 1) // tb) * tb
    if B_pad != B:
        hidden_states = jnp.pad(hidden_states, ((0, B_pad - B), (0, 0), (0, 0)))
        lengths = jnp.pad(lengths, (0, B_pad - B))   # padded polylines get length 0

    x = hidden_states.astype(compute_dtype)
    w1c = w1.astype(compute_dtype)
    w2c = w2.astype(compute_dtype)
    lens2d = lengths.reshape(B_pad, 1)

    out = pl.pallas_call(
        _sub_graph_kernel,
        out_shape=jax.ShapeDtypeStruct((B_pad, H), jnp.float32),
        grid_spec=pltpu.PrefetchScalarGridSpec(
            num_scalar_prefetch=0,
            grid=(B_pad // tb,),
            in_specs=[
                pl.BlockSpec((tb, L, H), lambda b: (b, 0, 0)),       # hidden_states
                pl.BlockSpec((tb, 1), lambda b: (b, 0)),             # lengths column
                pl.BlockSpec((DEPTH, H, H), lambda b: (0, 0, 0)),    # W1 stacked
                pl.BlockSpec((DEPTH, 1, H), lambda b: (0, 0, 0)),    # b1
                pl.BlockSpec((DEPTH, 1, H), lambda b: (0, 0, 0)),    # LN gamma
                pl.BlockSpec((DEPTH, 1, H), lambda b: (0, 0, 0)),    # LN beta
                pl.BlockSpec((DEPTH, H, H2), lambda b: (0, 0, 0)),   # W2 stacked
                pl.BlockSpec((DEPTH, 1, H2), lambda b: (0, 0, 0)),   # b2
            ],
            out_specs=pl.BlockSpec((tb, H), lambda b: (b, 0)),
        ),
        compiler_params=pltpu.CompilerParams(
            dimension_semantics=("parallel",),        # batch tiles independent
            vmem_limit_bytes=32 * 1024 * 1024,        # raise v5e's 16 MiB default
        ),
    )(x, lens2d, w1c, b1, g, be, w2c, b2)
    return out[:B]


def init_params(key, H):
    """Deterministic synthetic parameters (shapes match the torch module)."""
    H2 = H // 2
    ks = jax.random.split(key, 4 * DEPTH)
    w1 = jnp.stack([0.1 * jax.random.normal(ks[4 * l + 0], (H, H), jnp.float32)
                    for l in range(DEPTH)])
    b1 = jnp.stack([0.1 * jax.random.normal(ks[4 * l + 1], (1, H), jnp.float32)
                    for l in range(DEPTH)])
    g = jnp.ones((DEPTH, 1, H), jnp.float32)     # LayerNorm weight
    be = jnp.zeros((DEPTH, 1, H), jnp.float32)   # LayerNorm bias
    w2 = jnp.stack([0.1 * jax.random.normal(ks[4 * l + 2], (H, H2), jnp.float32)
                    for l in range(DEPTH)])
    b2 = jnp.stack([0.1 * jax.random.normal(ks[4 * l + 3], (1, H2), jnp.float32)
                    for l in range(DEPTH)])
    return (w1, b1, g, be, w2, b2)


def ref_forward(hidden_states, lengths, params):
    """Pure-JAX reference mirroring the torch forward, for correctness check."""
    w1, b1, g, be, w2, b2 = params
    B, L, H = hidden_states.shape
    idx = jnp.arange(L)[None, :]
    pad = idx >= jnp.asarray(lengths, jnp.int32)[:, None]
    mask = jnp.where(pad[:, :, None], -10000.0, 0.0)
    hs = hidden_states
    for l in range(DEPTH):
        h = hs @ w1[l] + b1[l]
        mu = h.mean(-1, keepdims=True)
        var = ((h - mu) ** 2).mean(-1, keepdims=True)
        hn = (h - mu) / jnp.sqrt(var + LN_EPS) * g[l] + be[l]
        hr = jnp.maximum(hn, 0.0)
        enc = hr @ w2[l] + b2[l]
        mx = jnp.maximum(jnp.max(enc + mask, axis=1), 0.0)
        hs = jnp.concatenate(
            [enc, jnp.broadcast_to(mx[:, None, :], enc.shape)], axis=-1)
    return jnp.max(hs + mask, axis=1)


if __name__ == "__main__":
    H = 32                      # hidden_size
    lengths = [8, 5]            # per-polyline vector counts (lane_list lengths)
    B = len(lengths)
    L = max(lengths)

    key = jax.random.PRNGKey(0)
    k_lane, k_param = jax.random.split(key)
    lane_keys = jax.random.split(k_lane, B)
    lane_list = [jax.random.normal(lane_keys[i], (lengths[i], H), jnp.float32)
                 for i in range(B)]

    # merge_tensors: pad the ragged lane_list to [B, L, H]
    hidden_states = jnp.zeros((B, L, H), jnp.float32)
    for i, t in enumerate(lane_list):
        hidden_states = hidden_states.at[i, : t.shape[0]].set(t)

    params = init_params(k_param, H)
    ref = ref_forward(hidden_states, lengths, params)

    # f32 compute path (default): tight tolerance against the reference.
    out = sub_graph_forward(hidden_states, lengths, params)
    out = jax.block_until_ready(out)
    assert out.shape == (B, H)
    assert jnp.allclose(out, ref, atol=1e-3, rtol=1e-3)

    # bf16 MXU-operand path (production choice on v6e/v7x): looser tolerance.
    out_bf16 = sub_graph_forward(hidden_states, lengths, params,
                                 compute_dtype=jnp.bfloat16)
    out_bf16 = jax.block_until_ready(out_bf16)
    assert out_bf16.shape == (B, H)
    assert jnp.allclose(out_bf16, ref, atol=5e-2, rtol=5e-2)

    print("KERNEL_OK")
</pallas_src>

<mosaic_0001>
module attributes {stable_mosaic.version = 11 : i64} {
  func.func @_sub_graph_kernel(%arg0: i32, %arg1: memref<8x8x32xf32, #tpu.memory_space<vmem>>, %arg2: memref<8x1xi32, #tpu.memory_space<vmem>>, %arg3: memref<3x32x32xf32, #tpu.memory_space<vmem>>, %arg4: memref<3x1x32xf32, #tpu.memory_space<vmem>>, %arg5: memref<3x1x32xf32, #tpu.memory_space<vmem>>, %arg6: memref<3x1x32xf32, #tpu.memory_space<vmem>>, %arg7: memref<3x32x16xf32, #tpu.memory_space<vmem>>, %arg8: memref<3x1x16xf32, #tpu.memory_space<vmem>>, %arg9: memref<8x32xf32, #tpu.memory_space<vmem>>) attributes {dimension_semantics = [#tpu.dimension_semantics<parallel>], iteration_bounds = array<i64: 1>, scalar_prefetch = 0 : i64, scratch_operands = 0 : i64, tpu.core_type = #tpu.core_type<tc>, window_params = [{transform_indices = @transform_0, window_bounds = array<i64: 8, 8, 32>}, {transform_indices = @transform_1, window_bounds = array<i64: 8, 1>}, {pipeline_mode = #tpu.pipeline_mode<synchronous>, transform_indices = @transform_2, window_bounds = array<i64: 3, 32, 32>}, {pipeline_mode = #tpu.pipeline_mode<synchronous>, transform_indices = @transform_3, window_bounds = array<i64: 3, 1, 32>}, {pipeline_mode = #tpu.pipeline_mode<synchronous>, transform_indices = @transform_4, window_bounds = array<i64: 3, 1, 32>}, {pipeline_mode = #tpu.pipeline_mode<synchronous>, transform_indices = @transform_5, window_bounds = array<i64: 3, 1, 32>}, {pipeline_mode = #tpu.pipeline_mode<synchronous>, transform_indices = @transform_6, window_bounds = array<i64: 3, 32, 16>}, {pipeline_mode = #tpu.pipeline_mode<synchronous>, transform_indices = @transform_7, window_bounds = array<i64: 3, 1, 16>}, {transform_indices = @transform_8, window_bounds = array<i64: 8, 32>}]} {
    %c0 = arith.constant 0 : index
    %c0_0 = arith.constant 0 : index
    %0 = vector.load %arg2[%c0, %c0_0] : memref<8x1xi32, #tpu.memory_space<vmem>>, vector<8x1xi32>
    %1 = tpu.iota {dimensions = array<i32: 1>} : vector<8x8xi32>
    %2 = vector.broadcast %0 : vector<8x1xi32> to vector<8x8xi32>
    %3 = arith.cmpi sge, %1, %2 : vector<8x8xi32>
    %cst = arith.constant -1.000000e+04 : f32
    %cst_1 = arith.constant 0.000000e+00 : f32
    %4 = vector.broadcast %cst : f32 to vector<8x8xf32>
    %5 = vector.broadcast %cst_1 : f32 to vector<8x8xf32>
    %6 = arith.select %3, %4, %5 : vector<8x8xi1>, vector<8x8xf32>
    %7 = vector.shape_cast %6 : vector<8x8xf32> to vector<8x8x1xf32>
    %c0_2 = arith.constant 0 : index
    %c0_3 = arith.constant 0 : index
    %c0_4 = arith.constant 0 : index
    %8 = vector.load %arg3[%c0_2, %c0_3, %c0_4] : memref<3x32x32xf32, #tpu.memory_space<vmem>>, vector<1x32x32xf32>
    %9 = vector.shape_cast %8 : vector<1x32x32xf32> to vector<32x32xf32>
    %c0_5 = arith.constant 0 : index
    %c0_6 = arith.constant 0 : index
    %c0_7 = arith.constant 0 : index
    %10 = vector.load %arg4[%c0_5, %c0_6, %c0_7] : memref<3x1x32xf32, #tpu.memory_space<vmem>>, vector<1x1x32xf32>
    %11 = vector.shape_cast %10 : vector<1x1x32xf32> to vector<1x32xf32>
    %c0_8 = arith.constant 0 : index
    %c0_9 = arith.constant 0 : index
    %c0_10 = arith.constant 0 : index
    %12 = vector.load %arg5[%c0_8, %c0_9, %c0_10] : memref<3x1x32xf32, #tpu.memory_space<vmem>>, vector<1x1x32xf32>
    %13 = vector.shape_cast %12 : vector<1x1x32xf32> to vector<1x32xf32>
    %c0_11 = arith.constant 0 : index
    %c0_12 = arith.constant 0 : index
    %c0_13 = arith.constant 0 : index
    %14 = vector.load %arg6[%c0_11, %c0_12, %c0_13] : memref<3x1x32xf32, #tpu.memory_space<vmem>>, vector<1x1x32xf32>
    %15 = vector.shape_cast %14 : vector<1x1x32xf32> to vector<1x32xf32>
    %c0_14 = arith.constant 0 : index
    %c0_15 = arith.constant 0 : index
    %c0_16 = arith.constant 0 : index
    %16 = vector.load %arg7[%c0_14, %c0_15, %c0_16] : memref<3x32x16xf32, #tpu.memory_space<vmem>>, vector<1x32x16xf32>
    %17 = vector.shape_cast %16 : vector<1x32x16xf32> to vector<32x16xf32>
    %c0_17 = arith.constant 0 : index
    %c0_18 = arith.constant 0 : index
    %c0_19 = arith.constant 0 : index
    %18 = vector.load %arg8[%c0_17, %c0_18, %c0_19] : memref<3x1x16xf32, #tpu.memory_space<vmem>>, vector<1x1x16xf32>
    %19 = vector.shape_cast %18 : vector<1x1x16xf32> to vector<1x16xf32>
    %c0_20 = arith.constant 0 : index
    %c0_21 = arith.constant 0 : index
    %c0_22 = arith.constant 0 : index
    %20 = vector.load %arg1[%c0_20, %c0_21, %c0_22] : memref<8x8x32xf32, #tpu.memory_space<vmem>>, vector<8x8x32xf32>
    %21 = vector.shape_cast %20 : vector<8x8x32xf32> to vector<64x32xf32>
    %cst_23 = arith.constant dense<0.000000e+00> : vector<64x32xf32>
    %22 = tpu.matmul %21, %9, %cst_23 {dimension_numbers = #tpu.dot_dimension_numbers<[1], [0], [0], [1], [0, 0, 1, 1], [], []>} : vector<64x32xf32>, vector<32x32xf32>, vector<64x32xf32> -> vector<64x32xf32>
    %23 = vector.broadcast %11 : vector<1x32xf32> to vector<64x32xf32>
    %24 = arith.addf %22, %23 : vector<64x32xf32>
    %cst_24 = arith.constant dense<0.000000e+00> : vector<64xf32>
    %25 = vector.multi_reduction <add>, %24, %cst_24 [1] : vector<64x32xf32> to vector<64xf32>
    %26 = vector.shape_cast %25 : vector<64xf32> to vector<64x1xf32>
    %cst_25 = arith.constant 3.200000e+01 : f32
    %27 = vector.broadcast %cst_25 : f32 to vector<64x1xf32>
    %28 = arith.divf %26, %27 : vector<64x1xf32>
    %29 = vector.broadcast %28 : vector<64x1xf32> to vector<64x32xf32>
    %30 = arith.subf %24, %29 : vector<64x32xf32>
    %31 = arith.mulf %30, %30 : vector<64x32xf32>
    %cst_26 = arith.constant dense<0.000000e+00> : vector<64xf32>
    %32 = vector.multi_reduction <add>, %31, %cst_26 [1] : vector<64x32xf32> to vector<64xf32>
    %33 = vector.shape_cast %32 : vector<64xf32> to vector<64x1xf32>
    %cst_27 = arith.constant 3.200000e+01 : f32
    %34 = vector.broadcast %cst_27 : f32 to vector<64x1xf32>
    %35 = arith.divf %33, %34 : vector<64x1xf32>
    %cst_28 = arith.constant 9.99999974E-6 : f32
    %36 = vector.broadcast %cst_28 : f32 to vector<64x1xf32>
    %37 = arith.addf %35, %36 : vector<64x1xf32>
    %38 = math.rsqrt %37 : vector<64x1xf32>
    %39 = vector.broadcast %38 : vector<64x1xf32> to vector<64x32xf32>
    %40 = arith.mulf %30, %39 : vector<64x32xf32>
    %41 = vector.broadcast %13 : vector<1x32xf32> to vector<64x32xf32>
    %42 = arith.mulf %40, %41 : vector<64x32xf32>
    %43 = vector.broadcast %15 : vector<1x32xf32> to vector<64x32xf32>
    %44 = arith.addf %42, %43 : vector<64x32xf32>
    %cst_29 = arith.constant 0.000000e+00 : f32
    %45 = vector.broadcast %cst_29 : f32 to vector<64x32xf32>
    %46 = arith.maximumf %44, %45 : vector<64x32xf32>
    %cst_30 = arith.constant dense<0.000000e+00> : vector<64x16xf32>
    %47 = tpu.matmul %46, %17, %cst_30 {dimension_numbers = #tpu.dot_dimension_numbers<[1], [0], [0], [1], [0, 0, 1, 1], [], []>} : vector<64x32xf32>, vector<32x16xf32>, vector<64x16xf32> -> vector<64x16xf32>
    %48 = vector.broadcast %19 : vector<1x16xf32> to vector<64x16xf32>
    %49 = arith.addf %47, %48 : vector<64x16xf32>
    %50 = vector.shape_cast %49 : vector<64x16xf32> to vector<8x8x16xf32>
    %51 = vector.broadcast %7 : vector<8x8x1xf32> to vector<8x8x16xf32>
    %52 = arith.addf %50, %51 : vector<8x8x16xf32>
    %cst_31 = arith.constant dense<0xFF800000> : vector<8x16xf32>
    %53 = vector.multi_reduction <maximumf>, %52, %cst_31 [1] : vector<8x8x16xf32> to vector<8x16xf32>
    %cst_32 = arith.constant 0.000000e+00 : f32
    %54 = vector.broadcast %cst_32 : f32 to vector<8x16xf32>
    %55 = arith.maximumf %53, %54 : vector<8x16xf32>
    %c1 = arith.constant 1 : index
    %c0_33 = arith.constant 0 : index
    %c0_34 = arith.constant 0 : index
    %56 = vector.load %arg3[%c1, %c0_33, %c0_34] : memref<3x32x32xf32, #tpu.memory_space<vmem>>, vector<1x32x32xf32>
    %57 = vector.shape_cast %56 : vector<1x32x32xf32> to vector<32x32xf32>
    %c1_35 = arith.constant 1 : index
    %c0_36 = arith.constant 0 : index
    %c0_37 = arith.constant 0 : index
    %58 = vector.load %arg4[%c1_35, %c0_36, %c0_37] : memref<3x1x32xf32, #tpu.memory_space<vmem>>, vector<1x1x32xf32>
    %59 = vector.shape_cast %58 : vector<1x1x32xf32> to vector<1x32xf32>
    %c1_38 = arith.constant 1 : index
    %c0_39 = arith.constant 0 : index
    %c0_40 = arith.constant 0 : index
    %60 = vector.load %arg5[%c1_38, %c0_39, %c0_40] : memref<3x1x32xf32, #tpu.memory_space<vmem>>, vector<1x1x32xf32>
    %61 = vector.shape_cast %60 : vector<1x1x32xf32> to vector<1x32xf32>
    %c1_41 = arith.constant 1 : index
    %c0_42 = arith.constant 0 : index
    %c0_43 = arith.constant 0 : index
    %62 = vector.load %arg6[%c1_41, %c0_42, %c0_43] : memref<3x1x32xf32, #tpu.memory_space<vmem>>, vector<1x1x32xf32>
    %63 = vector.shape_cast %62 : vector<1x1x32xf32> to vector<1x32xf32>
    %c1_44 = arith.constant 1 : index
    %c0_45 = arith.constant 0 : index
    %c0_46 = arith.constant 0 : index
    %64 = vector.load %arg7[%c1_44, %c0_45, %c0_46] : memref<3x32x16xf32, #tpu.memory_space<vmem>>, vector<1x32x16xf32>
    %65 = vector.shape_cast %64 : vector<1x32x16xf32> to vector<32x16xf32>
    %c1_47 = arith.constant 1 : index
    %c0_48 = arith.constant 0 : index
    %c0_49 = arith.constant 0 : index
    %66 = vector.load %arg8[%c1_47, %c0_48, %c0_49] : memref<3x1x16xf32, #tpu.memory_space<vmem>>, vector<1x1x16xf32>
    %67 = vector.shape_cast %66 : vector<1x1x16xf32> to vector<1x16xf32>
    %68 = vector.extract_strided_slice %57 {offsets = [0, 0], sizes = [16, 32], strides = [1, 1]} : vector<32x32xf32> to vector<16x32xf32>
    %cst_50 = arith.constant dense<0.000000e+00> : vector<64x32xf32>
    %69 = tpu.matmul %49, %68, %cst_50 {dimension_numbers = #tpu.dot_dimension_numbers<[1], [0], [0], [1], [0, 0, 1, 1], [], []>} : vector<64x16xf32>, vector<16x32xf32>, vector<64x32xf32> -> vector<64x32xf32>
    %70 = vector.extract_strided_slice %57 {offsets = [16, 0], sizes = [16, 32], strides = [1, 1]} : vector<32x32xf32> to vector<16x32xf32>
    %cst_51 = arith.constant dense<0.000000e+00> : vector<8x32xf32>
    %71 = tpu.matmul %55, %70, %cst_51 {dimension_numbers = #tpu.dot_dimension_numbers<[1], [0], [0], [1], [0, 0, 1, 1], [], []>} : vector<8x16xf32>, vector<16x32xf32>, vector<8x32xf32> -> vector<8x32xf32>
    %72 = vector.shape_cast %69 : vector<64x32xf32> to vector<8x8x32xf32>
    %73 = vector.shape_cast %71 : vector<8x32xf32> to vector<8x1x32xf32>
    %74 = vector.broadcast %73 : vector<8x1x32xf32> to vector<8x8x32xf32>
    %75 = arith.addf %72, %74 : vector<8x8x32xf32>
    %76 = vector.shape_cast %59 : vector<1x32xf32> to vector<1x1x32xf32>
    %77 = vector.broadcast %76 : vector<1x1x32xf32> to vector<8x8x32xf32>
    %78 = arith.addf %75, %77 : vector<8x8x32xf32>
    %79 = vector.shape_cast %78 : vector<8x8x32xf32> to vector<64x32xf32>
    %cst_52 = arith.constant dense<0.000000e+00> : vector<64xf32>
    %80 = vector.multi_reduction <add>, %79, %cst_52 [1] : vector<64x32xf32> to vector<64xf32>
    %81 = vector.shape_cast %80 : vector<64xf32> to vector<64x1xf32>
    %cst_53 = arith.constant 3.200000e+01 : f32
    %82 = vector.broadcast %cst_53 : f32 to vector<64x1xf32>
    %83 = arith.divf %81, %82 : vector<64x1xf32>
    %84 = vector.broadcast %83 : vector<64x1xf32> to vector<64x32xf32>
    %85 = arith.subf %79, %84 : vector<64x32xf32>
    %86 = arith.mulf %85, %85 : vector<64x32xf32>
    %cst_54 = arith.constant dense<0.000000e+00> : vector<64xf32>
    %87 = vector.multi_reduction <add>, %86, %cst_54 [1] : vector<64x32xf32> to vector<64xf32>
    %88 = vector.shape_cast %87 : vector<64xf32> to vector<64x1xf32>
    %cst_55 = arith.constant 3.200000e+01 : f32
    %89 = vector.broadcast %cst_55 : f32 to vector<64x1xf32>
    %90 = arith.divf %88, %89 : vector<64x1xf32>
    %cst_56 = arith.constant 9.99999974E-6 : f32
    %91 = vector.broadcast %cst_56 : f32 to vector<64x1xf32>
    %92 = arith.addf %90, %91 : vector<64x1xf32>
    %93 = math.rsqrt %92 : vector<64x1xf32>
    %94 = vector.broadcast %93 : vector<64x1xf32> to vector<64x32xf32>
    %95 = arith.mulf %85, %94 : vector<64x32xf32>
    %96 = vector.broadcast %61 : vector<1x32xf32> to vector<64x32xf32>
    %97 = arith.mulf %95, %96 : vector<64x32xf32>
    %98 = vector.broadcast %63 : vector<1x32xf32> to vector<64x32xf32>
    %99 = arith.addf %97, %98 : vector<64x32xf32>
    %cst_57 = arith.constant 0.000000e+00 : f32
    %100 = vector.broadcast %cst_57 : f32 to vector<64x32xf32>
    %101 = arith.maximumf %99, %100 : vector<64x32xf32>
    %cst_58 = arith.constant dense<0.000000e+00> : vector<64x16xf32>
    %102 = tpu.matmul %101, %65, %cst_58 {dimension_numbers = #tpu.dot_dimension_numbers<[1], [0], [0], [1], [0, 0, 1, 1], [], []>} : vector<64x32xf32>, vector<32x16xf32>, vector<64x16xf32> -> vector<64x16xf32>
    %103 = vector.broadcast %67 : vector<1x16xf32> to vector<64x16xf32>
    %104 = arith.addf %102, %103 : vector<64x16xf32>
    %105 = vector.shape_cast %104 : vector<64x16xf32> to vector<8x8x16xf32>
    %106 = vector.broadcast %7 : vector<8x8x1xf32> to vector<8x8x16xf32>
    %107 = arith.addf %105, %106 : vector<8x8x16xf32>
    %cst_59 = arith.constant dense<0xFF800000> : vector<8x16xf32>
    %108 = vector.multi_reduction <maximumf>, %107, %cst_59 [1] : vector<8x8x16xf32> to vector<8x16xf32>
    %cst_60 = arith.constant 0.000000e+00 : f32
    %109 = vector.broadcast %cst_60 : f32 to vector<8x16xf32>
    %110 = arith.maximumf %108, %109 : vector<8x16xf32>
    %c2 = arith.constant 2 : index
    %c0_61 = arith.constant 0 : index
    %c0_62 = arith.constant 0 : index
    %111 = vector.load %arg3[%c2, %c0_61, %c0_62] : memref<3x32x32xf32, #tpu.memory_space<vmem>>, vector<1x32x32xf32>
    %112 = vector.shape_cast %111 : vector<1x32x32xf32> to vector<32x32xf32>
    %c2_63 = arith.constant 2 : index
    %c0_64 = arith.constant 0 : index
    %c0_65 = arith.constant 0 : index
    %113 = vector.load %arg4[%c2_63, %c0_64, %c0_65] : memref<3x1x32xf32, #tpu.memory_space<vmem>>, vector<1x1x32xf32>
    %114 = vector.shape_cast %113 : vector<1x1x32xf32> to vector<1x32xf32>
    %c2_66 = arith.constant 2 : index
    %c0_67 = arith.constant 0 : index
    %c0_68 = arith.constant 0 : index
    %115 = vector.load %arg5[%c2_66, %c0_67, %c0_68] : memref<3x1x32xf32, #tpu.memory_space<vmem>>, vector<1x1x32xf32>
    %116 = vector.shape_cast %115 : vector<1x1x32xf32> to vector<1x32xf32>
    %c2_69 = arith.constant 2 : index
    %c0_70 = arith.constant 0 : index
    %c0_71 = arith.constant 0 : index
    %117 = vector.load %arg6[%c2_69, %c0_70, %c0_71] : memref<3x1x32xf32, #tpu.memory_space<vmem>>, vector<1x1x32xf32>
    %118 = vector.shape_cast %117 : vector<1x1x32xf32> to vector<1x32xf32>
    %c2_72 = arith.constant 2 : index
    %c0_73 = arith.constant 0 : index
    %c0_74 = arith.constant 0 : index
    %119 = vector.load %arg7[%c2_72, %c0_73, %c0_74] : memref<3x32x16xf32, #tpu.memory_space<vmem>>, vector<1x32x16xf32>
    %120 = vector.shape_cast %119 : vector<1x32x16xf32> to vector<32x16xf32>
    %c2_75 = arith.constant 2 : index
    %c0_76 = arith.constant 0 : index
    %c0_77 = arith.constant 0 : index
    %121 = vector.load %arg8[%c2_75, %c0_76, %c0_77] : memref<3x1x16xf32, #tpu.memory_space<vmem>>, vector<1x1x16xf32>
    %122 = vector.shape_cast %121 : vector<1x1x16xf32> to vector<1x16xf32>
    %123 = vector.extract_strided_slice %112 {offsets = [0, 0], sizes = [16, 32], strides = [1, 1]} : vector<32x32xf32> to vector<16x32xf32>
    %cst_78 = arith.constant dense<0.000000e+00> : vector<64x32xf32>
    %124 = tpu.matmul %104, %123, %cst_78 {dimension_numbers = #tpu.dot_dimension_numbers<[1], [0], [0], [1], [0, 0, 1, 1], [], []>} : vector<64x16xf32>, vector<16x32xf32>, vector<64x32xf32> -> vector<64x32xf32>
    %125 = vector.extract_strided_slice %112 {offsets = [16, 0], sizes = [16, 32], strides = [1, 1]} : vector<32x32xf32> to vector<16x32xf32>
    %cst_79 = arith.constant dense<0.000000e+00> : vector<8x32xf32>
    %126 = tpu.matmul %110, %125, %cst_79 {dimension_numbers = #tpu.dot_dimension_numbers<[1], [0], [0], [1], [0, 0, 1, 1], [], []>} : vector<8x16xf32>, vector<16x32xf32>, vector<8x32xf32> -> vector<8x32xf32>
    %127 = vector.shape_cast %124 : vector<64x32xf32> to vector<8x8x32xf32>
    %128 = vector.shape_cast %126 : vector<8x32xf32> to vector<8x1x32xf32>
    %129 = vector.broadcast %128 : vector<8x1x32xf32> to vector<8x8x32xf32>
    %130 = arith.addf %127, %129 : vector<8x8x32xf32>
    %131 = vector.shape_cast %114 : vector<1x32xf32> to vector<1x1x32xf32>
    %132 = vector.broadcast %131 : vector<1x1x32xf32> to vector<8x8x32xf32>
    %133 = arith.addf %130, %132 : vector<8x8x32xf32>
    %134 = vector.shape_cast %133 : vector<8x8x32xf32> to vector<64x32xf32>
    %cst_80 = arith.constant dense<0.000000e+00> : vector<64xf32>
    %135 = vector.multi_reduction <add>, %134, %cst_80 [1] : vector<64x32xf32> to vector<64xf32>
    %136 = vector.shape_cast %135 : vector<64xf32> to vector<64x1xf32>
    %cst_81 = arith.constant 3.200000e+01 : f32
    %137 = vector.broadcast %cst_81 : f32 to vector<64x1xf32>
    %138 = arith.divf %136, %137 : vector<64x1xf32>
    %139 = vector.broadcast %138 : vector<64x1xf32> to vector<64x32xf32>
    %140 = arith.subf %134, %139 : vector<64x32xf32>
    %141 = arith.mulf %140, %140 : vector<64x32xf32>
    %cst_82 = arith.constant dense<0.000000e+00> : vector<64xf32>
    %142 = vector.multi_reduction <add>, %141, %cst_82 [1] : vector<64x32xf32> to vector<64xf32>
    %143 = vector.shape_cast %142 : vector<64xf32> to vector<64x1xf32>
    %cst_83 = arith.constant 3.200000e+01 : f32
    %144 = vector.broadcast %cst_83 : f32 to vector<64x1xf32>
    %145 = arith.divf %143, %144 : vector<64x1xf32>
    %cst_84 = arith.constant 9.99999974E-6 : f32
    %146 = vector.broadcast %cst_84 : f32 to vector<64x1xf32>
    %147 = arith.addf %145, %146 : vector<64x1xf32>
    %148 = math.rsqrt %147 : vector<64x1xf32>
    %149 = vector.broadcast %148 : vector<64x1xf32> to vector<64x32xf32>
    %150 = arith.mulf %140, %149 : vector<64x32xf32>
    %151 = vector.broadcast %116 : vector<1x32xf32> to vector<64x32xf32>
    %152 = arith.mulf %150, %151 : vector<64x32xf32>
    %153 = vector.broadcast %118 : vector<1x32xf32> to vector<64x32xf32>
    %154 = arith.addf %152, %153 : vector<64x32xf32>
    %cst_85 = arith.constant 0.000000e+00 : f32
    %155 = vector.broadcast %cst_85 : f32 to vector<64x32xf32>
    %156 = arith.maximumf %154, %155 : vector<64x32xf32>
    %cst_86 = arith.constant dense<0.000000e+00> : vector<64x16xf32>
    %157 = tpu.matmul %156, %120, %cst_86 {dimension_numbers = #tpu.dot_dimension_numbers<[1], [0], [0], [1], [0, 0, 1, 1], [], []>} : vector<64x32xf32>, vector<32x16xf32>, vector<64x16xf32> -> vector<64x16xf32>
    %158 = vector.broadcast %122 : vector<1x16xf32> to vector<64x16xf32>
    %159 = arith.addf %157, %158 : vector<64x16xf32>
    %160 = vector.shape_cast %159 : vector<64x16xf32> to vector<8x8x16xf32>
    %161 = vector.broadcast %7 : vector<8x8x1xf32> to vector<8x8x16xf32>
    %162 = arith.addf %160, %161 : vector<8x8x16xf32>
    %cst_87 = arith.constant dense<0xFF800000> : vector<8x16xf32>
    %163 = vector.multi_reduction <maximumf>, %162, %cst_87 [1] : vector<8x8x16xf32> to vector<8x16xf32>
    %cst_88 = arith.constant 0.000000e+00 : f32
    %164 = vector.broadcast %cst_88 : f32 to vector<8x16xf32>
    %165 = arith.maximumf %163, %164 : vector<8x16xf32>
    %166 = tpu.concatenate %163, %165 in 1 : vector<8x16xf32>, vector<8x16xf32> -> vector<8x32xf32>
    %c0_89 = arith.constant 0 : index
    %c0_90 = arith.constant 0 : index
    %167 = vector.load %arg9[%c0_89, %c0_90] : memref<8x32xf32, #tpu.memory_space<vmem>>, vector<8x32xf32>
    tpu.vector_store %arg9[%c0_89, %c0_90], %166 {strides = array<i32>} : memref<8x32xf32, #tpu.memory_space<vmem>>, vector<8x32xf32>,
    return
  }
  func.func @transform_0(%arg0: i32) -> (i32, i32, i32) {
    %c0_i32 = arith.constant 0 : i32
    %c0_i32_0 = arith.constant 0 : i32
    %c0_i32_1 = arith.constant 0 : i32
    return %arg0, %c0_i32, %c0_i32_0 : i32, i32, i32
  }
  func.func @transform_1(%arg0: i32) -> (i32, i32) {
    %c0_i32 = arith.constant 0 : i32
    %c0_i32_0 = arith.constant 0 : i32
    return %arg0, %c0_i32 : i32, i32
  }
  func.func @transform_2(%arg0: i32) -> (i32, i32, i32) {
    %c0_i32 = arith.constant 0 : i32
    %c0_i32_0 = arith.constant 0 : i32
    %c0_i32_1 = arith.constant 0 : i32
    %c0_i32_2 = arith.constant 0 : i32
    return %c0_i32, %c0_i32_0, %c0_i32_1 : i32, i32, i32
  }
  func.func @transform_3(%arg0: i32) -> (i32, i32, i32) {
    %c0_i32 = arith.constant 0 : i32
    %c0_i32_0 = arith.constant 0 : i32
    %c0_i32_1 = arith.constant 0 : i32
    %c0_i32_2 = arith.constant 0 : i32
    return %c0_i32, %c0_i32_0, %c0_i32_1 : i32, i32, i32
  }
  func.func @transform_4(%arg0: i32) -> (i32, i32, i32) {
    %c0_i32 = arith.constant 0 : i32
    %c0_i32_0 = arith.constant 0 : i32
    %c0_i32_1 = arith.constant 0 : i32
    %c0_i32_2 = arith.constant 0 : i32
    return %c0_i32, %c0_i32_0, %c0_i32_1 : i32, i32, i32
  }
  func.func @transform_5(%arg0: i32) -> (i32, i32, i32) {
    %c0_i32 = arith.constant 0 : i32
    %c0_i32_0 = arith.constant 0 : i32
    %c0_i32_1 = arith.constant 0 : i32
    %c0_i32_2 = arith.constant 0 : i32
    return %c0_i32, %c0_i32_0, %c0_i32_1 : i32, i32, i32
  }
  func.func @transform_6(%arg0: i32) -> (i32, i32, i32) {
    %c0_i32 = arith.constant 0 : i32
    %c0_i32_0 = arith.constant 0 : i32
    %c0_i32_1 = arith.constant 0 : i32
    %c0_i32_2 = arith.constant 0 : i32
    return %c0_i32, %c0_i32_0, %c0_i32_1 : i32, i32, i32
  }
  func.func @transform_7(%arg0: i32) -> (i32, i32, i32) {
    %c0_i32 = arith.constant 0 : i32
    %c0_i32_0 = arith.constant 0 : i32
    %c0_i32_1 = arith.constant 0 : i32
    %c0_i32_2 = arith.constant 0 : i32
    return %c0_i32, %c0_i32_0, %c0_i32_1 : i32, i32, i32
  }
  func.func @transform_8(%arg0: i32) -> (i32, i32) {
    %c0_i32 = arith.constant 0 : i32
    %c0_i32_0 = arith.constant 0 : i32
    return %arg0, %c0_i32 : i32, i32
  }
}

</mosaic_0001>

<bundles_post_ra>
// kernel: tpu_custom_call.1
= control target key start
LH: loop header
LB: loop body
LE: loop exit
PB: predicated region body
PF: predicated region fallthrough
CT: control target
= control target key end

     0   :  { %13 = vsyncpa [#allocation3], 0  ;;  %s2537_s0 = inlined_call_operand.hbm [shape: f32[8,8,32], index: 0, kind: input, shape index: {}]   ;;  %s2538_s1 = inlined_call_operand.vmem [shape: s32[8,1], index: 1, kind: input, shape index: {}]   ;;  %s2539_s2 = inlined_call_operand.vmem [shape: f32[3,32,32], index: 2, kind: input, shape index: {}]   ;;  %s2540_s3 = inlined_call_operand.vmem [shape: f32[3,1,32], index: 3, kind: input, shape index: {}]   ;;  %s2541_s4 = inlined_call_operand.vmem [shape: f32[3,1,32], index: 4, kind: input, shape index: {}]   ;;  %s2542_s5 = inlined_call_operand.vmem [shape: f32[3,1,32], index: 5, kind: input, shape index: {}]   ;;  %s2543_s6 = inlined_call_operand.vmem [shape: f32[3,32,16], index: 6, kind: input, shape index: {}]   ;;  %s2544_s7 = inlined_call_operand.vmem [shape: f32[3,1,16], index: 7, kind: input, shape index: {}]   ;;  %s2545_s8 = inlined_call_operand.hbm [shape: f32[8,32], index: 8, kind: output, shape index: {}]  }
   0x1   :  { %14 = vsyncpa [#allocation4], 0  ;;  %s19_s29 = sshll.u32 %s2537_s0, 4  ;;  %s1837_s30 = smov [#allocation2]   ;;  %s20_s29 = int_to_ptr.hbm [resolvable:$true] %s19_s29 }
   0x2   :  { %s21_s9 = sshll.u32 %s1837_s30, 4  ;;  %s1838_s10 = smov 128   ;;  %s22_s9 = int_to_ptr.vmem [resolvable:$true] %s21_s9 }
   0x3   :  { %s1839_s11 = smov 8  }
   0x4   :  { %27 = dma.hbm_to_vmem [thread:$0]  %s20_s29, 1024, %s22_s9, [#allocation3], %s1838_s10, %s1838_s10, %s1839_s11  }
   0x5   :  { %1833 = dma.done.wait [#allocation3], 1024  }
   0x6   :  { %1834 = vsyncadd [#allocation3], 4294966272  ;;  %v113_v0 = vld [vmem:[%s2539_s2 + $0x18] sm:$0xff]  ;;  %v112_v1 = vld [vmem:[%s2539_s2 + $0x10] sm:$0xff]  ;;  %vm133_vm0 = vcmask 261120   ;;  %v1840_v37 = vmov 32.0  }
   0x7   :  { %170 = vmatpush.msra.mxu0 %v113_v0  ;;  %v111_v2 = vld [vmem:[%s2539_s2 + $0x8] sm:$0xff]  ;;  %v110_v3 = vld [vmem:[%s2539_s2] sm:$0xff]  ;;  %v124_v6 = vld [vmem:[#allocation2 + $0x10] sm:$0xff]  ;;  %1735 = vrcp.f32 %v1840_v37  ;;  %v1841_v54 = vmov 0   ;;  %s1844_s9 = smov [#allocation5]   ;;  %s1621_s13 = sshll.u32 %s2545_s8, 4  ;;  %s1622_s13 = int_to_ptr.hbm [resolvable:$true] %s1621_s13 }
   0x8   :  { %v122_v4 = vld [vmem:[#allocation2] sm:$0xff]  ;;  %v123_v5 = vld [vmem:[#allocation2 + $0x8] sm:$0xff]  ;;  %v125_v7 = vld [vmem:[#allocation2 + $0x18] sm:$0xff]  ;;  %1719 = vset.pattern.permute.xlu1 %v1841_v54  ;;  %s1619_s10 = sshll.u32 %s1844_s9, 4  ;;  %s1620_s10 = int_to_ptr.vmem [resolvable:$true] %s1619_s10 }
   0x9   :  { %171 = vmatpush.msra.mxu0 %v112_v1  ;;  %v126_v8 = vld [vmem:[#allocation2 + $0x20] sm:$0xff]  ;;  %v127_v9 = vld [vmem:[#allocation2 + $0x28] sm:$0xff]  ;;  %v128_v10 = vld [vmem:[#allocation2 + $0x30] sm:$0xff] }
   0xa   :  { %v129_v11 = vld [vmem:[#allocation2 + $0x38] sm:$0xff]  ;;  %v1723_v12 = vld [vmem:[%s2540_s3] ss:$0 sm:$0xff] }
   0xb   :  { %172 = vmatpush.msra.mxu0 %v111_v2 }
   0xd   :  { %173 = vmatpush.msra.mxu0 %v110_v3  ;;  %v1736_v38 = vpop.eup %1735 }
   0xe   :  { %1631 = vmatmul.msk.f32.vlgmr.msra.gmra.mxu0 %vm133_vm0, %v122_v4  ;;  %v224_v39 = vmul.f32 32.0, %v1736_v38  ;;  %vm228_vm1 = vweird.f32 %v1736_v38 }
  0x10   :  { %v225_v40 = vsub.f32 1.0, %v224_v39 }
  0x12   :  { %v226_v41 = vmul.f32 %v1736_v38, %v225_v40  ;;  %v1994_v40 = vld [vmem:[%s2541_s4] ss:$0 sm:$0xff] }
  0x14   :  { %v227_v42 = vadd.f32 %v1736_v38, %v226_v41 }
  0x16   :  { %1632 = vmatmul.msk.f32.gmra.mxu0 %vm133_vm0, %v123_v5  ;;  %v1924_v43 = vsel %vm228_vm1, %v1736_v38, %v227_v42 }
  0x1e   :  { %1633 = vmatmul.msk.f32.gmra.mxu0 %vm133_vm0, %v124_v6 }
  0x26   :  { %1634 = vmatmul.msk.f32.gmra.mxu0 %vm133_vm0, %v125_v7 }
  0x2e   :  { %1635 = vmatmul.msk.f32.gmra.mxu0 %vm133_vm0, %v126_v8 }
  0x36   :  { %1636 = vmatmul.msk.f32.gmra.mxu0 %vm133_vm0, %v127_v9 }
  0x3e   :  { %1637 = vmatmul.msk.f32.gmra.mxu0 %vm133_vm0, %v128_v10 }
  0x46   :  { %1638 = vmatmul.msk.f32.gmra.mxu0 %vm133_vm0, %v129_v11 }
  0x8b   :  { %v175_v13 = vpop.f32.mrf.mxu0 }
  0x8c   :  { %v176_v14 = vadd.f32 %v1723_v12, %v175_v13 }
  0x8e   :  { %v199_v15 = vsel %vm133_vm0, %v176_v14, 0.0 }
  0x8f   :  { %200 = vadd.xlane.f32.xlu0 %v199_v15 }
  0x93   :  { %v178_v16 = vpop.f32.mrf.mxu0 }
  0x94   :  { %v179_v17 = vadd.f32 %v1723_v12, %v178_v16 }
  0x96   :  { %v202_v18 = vsel %vm133_vm0, %v179_v17, 0.0 }
  0x97   :  { %203 = vadd.xlane.f32.xlu0 %v202_v18 }
  0x9b   :  { %v181_v19 = vpop.f32.mrf.mxu0 }
  0x9c   :  { %v182_v25 = vadd.f32 %v1723_v12, %v181_v19 }
  0x9e   :  { %v205_v29 = vsel %vm133_vm0, %v182_v25, 0.0 }
  0xa3   :  { %v184_v20 = vpop.f32.mrf.mxu0 }
  0xa4   :  { %v185_v30 = vadd.f32 %v1723_v12, %v184_v20 }
  0xa6   :  { %v208_v34 = vsel %vm133_vm0, %v185_v30, 0.0 }
  0xab   :  { %v187_v21 = vpop.f32.mrf.mxu0 }
  0xac   :  { %v188_v31 = vadd.f32 %v1723_v12, %v187_v21  ;;  %v46_v21 = vld [vmem:[%s2538_s1] sm:$0xff] }
  0xae   :  { %v211_v35 = vsel %vm133_vm0, %v188_v31, 0.0 }
  0xb3   :  { %v190_v22 = vpop.f32.mrf.mxu0 }
  0xb4   :  { %v191_v23 = vadd.f32 %v1723_v12, %v190_v22  ;;  %v120_v22 = vld [vmem:[%s2543_s6 + $0x18] sm:$0xff] }
  0xb5   :  { %451 = vmatpush.msra.mxu1 %v120_v22  ;;  %1705 = vmatpush.msra.mxu3 %v120_v22 }
  0xb6   :  { %v214_v24 = vsel %vm133_vm0, %v191_v23, 0.0 }
  0xb7   :  { %215 = vadd.xlane.f32.xlu1 %v214_v24  ;;  %v118_v24 = vld [vmem:[%s2543_s6 + $0x8] sm:$0xff] }
  0xbb   :  { %v193_v26 = vpop.f32.mrf.mxu0 }
  0xbc   :  { %v194_v27 = vadd.f32 %v1723_v12, %v193_v26 }
  0xbe   :  { %v217_v28 = vsel %vm133_vm0, %v194_v27, 0.0 }
  0xbf   :  { %218 = vadd.xlane.f32.xlu2 %v217_v28  ;;  %206 = vadd.xlane.f32.xlu1 %v205_v29 }
  0xc3   :  { %v196_v32 = vpop.f32.mrf.mxu0 }
  0xc4   :  { %v197_v33 = vadd.f32 %v1723_v12, %v196_v32 }
  0xc6   :  { %v220_v36 = vsel %vm133_vm0, %v197_v33, 0.0 }
  0xc7   :  { %209 = vadd.xlane.f32.xlu2 %v208_v34  ;;  %212 = vadd.xlane.f32.xlu1 %v211_v35 }
  0xc8   :  { %221 = vadd.xlane.f32.xlu0 %v220_v36 }
 0x102   :  { %v201_v44 = vpop.xlane.xlu0 %200 }
 0x103   :  { %v230_v45 = vmul.f32 %v1924_v43, %v201_v44 }
 0x105   :  { %v1927_v46 = vsub.f32 %v176_v14, %v230_v45  ;;  %v2000_v45 = vld [vmem:[%s2542_s5] ss:$0 sm:$0xff] }
 0x107   :  { %v246_v47 = vmul.f32 %v1927_v46, %v1927_v46 }
 0x109   :  { %v254_v48 = vsel %vm133_vm0, %v246_v47, 0.0 }
 0x10a   :  { %255 = vadd.xlane.f32.xlu2 %v254_v48  ;;  %v204_v49 = vpop.xlane.xlu0 %203 }
 0x10b   :  { %v231_v50 = vmul.f32 %v1924_v43, %v204_v49 }
 0x10d   :  { %v1933_v51 = vsub.f32 %v179_v17, %v231_v50 }
 0x10f   :  { %v247_v52 = vmul.f32 %v1933_v51, %v1933_v51 }
 0x111   :  { %v257_v53 = vsel %vm133_vm0, %v247_v52, 0.0 }
 0x112   :  { %258 = vadd.xlane.f32.xlu0 %v257_v53 }
 0x12a   :  { %v216_v55 = vpop.xlane.xlu1 %215 }
 0x12b   :  { %v235_v56 = vmul.f32 %v1924_v43, %v216_v55 }
 0x12d   :  { %v1939_v57 = vsub.f32 %v191_v23, %v235_v56  ;;  %v119_v23 = vld [vmem:[%s2543_s6 + $0x10] sm:$0xff] }
 0x12e   :  { %452 = vmatpush.msra.mxu1 %v119_v23  ;;  %1706 = vmatpush.msra.mxu3 %v119_v23 }
 0x12f   :  { %v251_v58 = vmul.f32 %v1939_v57, %v1939_v57 }
 0x130   :  { %453 = vmatpush.msra.mxu1 %v118_v24  ;;  %1707 = vmatpush.msra.mxu3 %v118_v24 }
 0x131   :  { %v269_v59 = vsel %vm133_vm0, %v251_v58, 0.0 }
 0x132   :  { %v219_v60 = vpop.xlane.xlu2 %218  ;;  %270 = vadd.xlane.f32.xlu1 %v269_v59  ;;  %v207_v61 = vpop.xlane.xlu1 %206 }
 0x133   :  { %v236_v62 = vmul.f32 %v1924_v43, %v219_v60  ;;  %v232_v63 = vmul.f32 %v1924_v43, %v207_v61 }
 0x135   :  { %v1946_v0 = vsub.f32 %v194_v27, %v236_v62  ;;  %v1948_v1 = vsub.f32 %v182_v25, %v232_v63  ;;  %v117_v25 = vld [vmem:[%s2543_s6] sm:$0xff]  ;;  %v47_v62 = vlaneseq }
 0x136   :  { %454 = vmatpush.msra.mxu1 %v117_v25  ;;  %1708 = vmatpush.msra.mxu3 %v117_v25 }
 0x137   :  { %v248_v2 = vmul.f32 %v1948_v1, %v1948_v1  ;;  %v252_v3 = vmul.f32 %v1946_v0, %v1946_v0  ;;  %v56_v63 = vshrl.u32 %v47_v62, 7 }
 0x139   :  { %v260_v4 = vsel %vm133_vm0, %v248_v2, 0.0  ;;  %v272_v5 = vsel %vm133_vm0, %v252_v3, 0.0  ;;  %1721 = vset.pattern.permute.xlu0 %v56_v63  ;;  %1720 = vset.pattern.permute.xlu2 %v56_v63 }
 0x13a   :  { %v210_v6 = vpop.xlane.xlu2 %209  ;;  %v213_v7 = vpop.xlane.xlu1 %212  ;;  %261 = vadd.xlane.f32.xlu2 %v260_v4  ;;  %273 = vadd.xlane.f32.xlu0 %v272_v5 }
 0x13b   :  { %v233_v8 = vmul.f32 %v1924_v43, %v210_v6  ;;  %v234_v9 = vmul.f32 %v1924_v43, %v213_v7  ;;  %v222_v10 = vpop.xlane.xlu0 %221 }
 0x13c   :  { %v237_v11 = vmul.f32 %v1924_v43, %v222_v10 }
 0x13d   :  { %v1959_v12 = vsub.f32 %v185_v30, %v233_v8  ;;  %v1961_v13 = vsub.f32 %v188_v31, %v234_v9 }
 0x13e   :  { %v1963_v14 = vsub.f32 %v197_v33, %v237_v11 }
 0x13f   :  { %v249_v15 = vmul.f32 %v1959_v12, %v1959_v12  ;;  %v250_v16 = vmul.f32 %v1961_v13, %v1961_v13 }
 0x140   :  { %v253_v17 = vmul.f32 %v1963_v14, %v1963_v14 }
 0x141   :  { %v263_v18 = vsel %vm133_vm0, %v249_v15, 0.0  ;;  %v266_v19 = vsel %vm133_vm0, %v250_v16, 0.0 }
 0x142   :  { %264 = vadd.xlane.f32.xlu1 %v263_v18  ;;  %267 = vadd.xlane.f32.xlu0 %v266_v19  ;;  %v275_v20 = vsel %vm133_vm0, %v253_v17, 0.0 }
 0x143   :  { %276 = vadd.xlane.f32.xlu2 %v275_v20 }
 0x15b   :  { %50 = vperm.xlu1 %1719, %v46_v21  }
 0x163   :  { %1722 = vset.pattern.permute.xlu1 %v56_v63 }
 0x17d   :  { %v256_v26 = vpop.xlane.xlu2 %255 }
 0x17e   :  { %v278_v27 = vmul.f32 %v256_v26, %v1924_v43 }
 0x180   :  { %v286_v28 = vadd.f32 1e-05, %v278_v27 }
 0x182   :  { %1737 = vrsqrt.f32 %v286_v28  ;;  %vm300_vm3 = vweird.f32 %v286_v28 }
 0x185   :  { %v259_v29 = vpop.xlane.xlu0 %258 }
 0x186   :  { %v279_v30 = vmul.f32 %v259_v29, %v1924_v43 }
 0x188   :  { %v1738_v31 = vpop.eup %1737  ;;  %v287_v32 = vadd.f32 1e-05, %v279_v30 }
 0x189   :  { %v295_v33 = vmul.f32 %v1738_v31, %v286_v28  ;;  %vm301_vm2 = vweird.f32 %v1738_v31 }
 0x18a   :  { %1739 = vrsqrt.f32 %v287_v32  ;;  %vm302_vm4 = vmor %vm300_vm3, %vm301_vm2  ;;  %vm310_vm6 = vweird.f32 %v287_v32 }
 0x18b   :  { %v296_v34 = vmul.f32 %v1738_v31, %v295_v33 }
 0x18d   :  { %v297_v35 = vmul.f32 0.5, %v296_v34 }
 0x18f   :  { %v298_v36 = vsub.f32 1.5, %v297_v35 }
 0x190   :  { %v1740_v37 = vpop.eup %1739 }
 0x191   :  { %v299_v38 = vmul.f32 %v1738_v31, %v298_v36  ;;  %v305_v39 = vmul.f32 %v1740_v37, %v287_v32  ;;  %vm311_vm5 = vweird.f32 %v1740_v37 }
 0x192   :  { %vm312_vm7 = vmor %vm310_vm6, %vm311_vm5 }
 0x193   :  { %v303_v41 = vsel %vm302_vm4, %v1738_v31, %v299_v38  ;;  %v306_v42 = vmul.f32 %v1740_v37, %v305_v39 }
 0x194   :  { %v374_v44 = vmul.f32 %v303_v41, %v1927_v46 }
 0x195   :  { %v307_v47 = vmul.f32 0.5, %v306_v42 }
 0x196   :  { %v385_v48 = vmul.f32 %v1994_v40, %v374_v44 }
 0x197   :  { %v308_v49 = vsub.f32 1.5, %v307_v47 }
 0x198   :  { %v396_v50 = vadd.f32 %v2000_v45, %v385_v48 }
 0x199   :  { %v309_v52 = vmul.f32 %v1740_v37, %v308_v49 }
 0x19a   :  { %v404_v53 = vmax.f32 %v396_v50, 0.0 }
 0x19b   :  { %v313_v54 = vsel %vm312_vm7, %v1740_v37, %v309_v52 }
 0x19c   :  { %1639 = vmatmul.msk.f32.vlgmr.msra.gmra.mxu1 %vm133_vm0, %v404_v53  ;;  %v375_v46 = vmul.f32 %v313_v54, %v1933_v51 }
 0x19e   :  { %v386_v55 = vmul.f32 %v1994_v40, %v375_v46 }
 0x1a0   :  { %v397_v56 = vadd.f32 %v2000_v45, %v386_v55 }
 0x1a2   :  { %v405_v58 = vmax.f32 %v397_v56, 0.0 }
 0x1a4   :  { %1640 = vmatmul.msk.f32.gmra.mxu1 %vm133_vm0, %v405_v58 }
 0x1a5   :  { %v271_v59 = vpop.xlane.xlu1 %270 }
 0x1a6   :  { %v283_v60 = vmul.f32 %v271_v59, %v1924_v43 }
 0x1a8   :  { %v291_v61 = vadd.f32 1e-05, %v283_v60 }
 0x1aa   :  { %1741 = vrsqrt.f32 %v291_v61  ;;  %vm350_vm9 = vweird.f32 %v291_v61 }
 0x1ad   :  { %v262_v2 = vpop.xlane.xlu2 %261  ;;  %v274_v3 = vpop.xlane.xlu0 %273 }
 0x1ae   :  { %v280_v51 = vmul.f32 %v262_v2, %v1924_v43  ;;  %v284_v4 = vmul.f32 %v274_v3, %v1924_v43 }
 0x1b0   :  { %v1742_v5 = vpop.eup %1741  ;;  %v288_v6 = vadd.f32 1e-05, %v280_v51  ;;  %v292_v7 = vadd.f32 1e-05, %v284_v4 }
 0x1b1   :  { %v345_v8 = vmul.f32 %v1742_v5, %v291_v61  ;;  %vm351_vm8 = vweird.f32 %v1742_v5 }
 0x1b2   :  { %1743 = vrsqrt.f32 %v288_v6  ;;  %vm352_vm10 = vmor %vm350_vm9, %vm351_vm8  ;;  %vm320_vm13 = vweird.f32 %v288_v6  ;;  %vm360_vm15 = vweird.f32 %v292_v7 }
 0x1b3   :  { %v346_v9 = vmul.f32 %v1742_v5, %v345_v8  ;;  %1745 = vrsqrt.f32 %v292_v7  ;;  %v48_v8 = vand.u32 127, %v47_v62 }
 0x1b5   :  { %v347_v10 = vmul.f32 0.5, %v346_v9  ;;  %v265_v11 = vpop.xlane.xlu1 %264  ;;  %v268_v15 = vpop.xlane.xlu0 %267 }
 0x1b6   :  { %v281_v16 = vmul.f32 %v265_v11, %v1924_v43  ;;  %v277_v17 = vpop.xlane.xlu2 %276  ;;  %v282_v18 = vmul.f32 %v268_v15, %v1924_v43 }
 0x1b7   :  { %v348_v19 = vsub.f32 1.5, %v347_v10  ;;  %v285_v20 = vmul.f32 %v277_v17, %v1924_v43 }
 0x1b8   :  { %v1744_v21 = vpop.eup %1743  ;;  %v289_v22 = vadd.f32 1e-05, %v281_v16  ;;  %v2016_v23 = vadd.f32 1e-05, %v282_v18 }
 0x1b9   :  { %v1746_v24 = vpop.eup %1745  ;;  %v349_v25 = vmul.f32 %v1742_v5, %v348_v19  ;;  %v315_v26 = vmul.f32 %v1744_v21, %v288_v6  ;;  %v293_v27 = vadd.f32 1e-05, %v285_v20  ;;  %vm321_vm11 = vweird.f32 %v1744_v21 }
 0x1ba   :  { %v355_v28 = vmul.f32 %v1746_v24, %v292_v7  ;;  %1747 = vrsqrt.f32 %v289_v22  ;;  %vm361_vm12 = vweird.f32 %v1746_v24  ;;  %vm322_vm14 = vmor %vm320_vm13, %vm321_vm11  ;;  %vm330_vm3 = vweird.f32 %v289_v22 }
 0x1bb   :  { %v353_v29 = vsel %vm352_vm10, %v1742_v5, %v349_v25  ;;  %v316_v30 = vmul.f32 %v1744_v21, %v315_v26  ;;  %1749 = vrsqrt.f32 %v293_v27  ;;  %vm362_vm1 = vmor %vm360_vm15, %vm361_vm12  ;;  %vm370_vm7 = vweird.f32 %v293_v27 }
 0x1bc   :  { %v356_v31 = vmul.f32 %v1746_v24, %v355_v28  ;;  %1751 = vrsqrt.f32 %v2016_v23  ;;  %v379_v32 = vmul.f32 %v353_v29, %v1939_v57  ;;  %vm340_vm9 = vweird.f32 %v2016_v23 }
 0x1bd   :  { %v317_v33 = vmul.f32 0.5, %v316_v30  ;;  %vm488_vm12 = vcmask 130048   ;;  %vm644_vm13 = vcmask 1041409   ;;  %vm648_vm15 = vcmask 1043459  }
 0x1be   :  { %v357_v34 = vmul.f32 0.5, %v356_v31  ;;  %v390_v35 = vmul.f32 %v1994_v40, %v379_v32 }
 0x1bf   :  { %v318_v36 = vsub.f32 1.5, %v317_v33 }
 0x1c0   :  { %v1748_v37 = vpop.eup %1747  ;;  %v358_v38 = vsub.f32 1.5, %v357_v34  ;;  %v401_v39 = vadd.f32 %v2000_v45, %v390_v35  ;;  %v1647_v35 = vld [vmem:[%s2539_s2 + $0x20] sm:$0xff] }
 0x1c1   :  { %v1750_v41 = vpop.eup %1749  ;;  %v319_v42 = vmul.f32 %v1744_v21, %v318_v36  ;;  %v325_v44 = vmul.f32 %v1748_v37, %v289_v22  ;;  %vm331_vm2 = vweird.f32 %v1748_v37  ;;  %v1726_v36 = vld [vmem:[%s2544_s7] ss:$0 sm:$0xff] }
 0x1c2   :  { %v1752_v47 = vpop.eup %1751  ;;  %v359_v48 = vmul.f32 %v1746_v24, %v358_v38  ;;  %v365_v57 = vmul.f32 %v1750_v41, %v293_v27  ;;  %v409_v49 = vmax.f32 %v401_v39, 0.0  ;;  %vm371_vm4 = vweird.f32 %v1750_v41  ;;  %vm332_vm6 = vmor %vm330_vm3, %vm331_vm2 }
 0x1c3   :  { %v323_v50 = vsel %vm322_vm14, %v1744_v21, %v319_v42  ;;  %v326_v52 = vmul.f32 %v1748_v37, %v325_v44  ;;  %v335_v53 = vmul.f32 %v1752_v47, %v2016_v23  ;;  %vm341_vm5 = vweird.f32 %v1752_v47  ;;  %vm372_vm8 = vmor %vm370_vm7, %vm371_vm4 }
 0x1c4   :  { %v363_v54 = vsel %vm362_vm1, %v1746_v24, %v359_v48  ;;  %v366_v46 = vmul.f32 %v1750_v41, %v365_v57  ;;  %1644 = vmatmul.msk.f32.vlgmr.msra.gmra.mxu3 %vm133_vm0, %v409_v49  ;;  %v376_v55 = vmul.f32 %v323_v50, %v1948_v1  ;;  %vm342_vm10 = vmor %vm340_vm9, %vm341_vm5  ;;  %v1842_v21 = vmov 0.0  }
 0x1c5   :  { %v327_v56 = vmul.f32 0.5, %v326_v52  ;;  %v336_v58 = vmul.f32 %v1752_v47, %v335_v53  ;;  %v380_v59 = vmul.f32 %v363_v54, %v1946_v0  ;;  %vm646_vm14 = vcmask 1042434  }
 0x1c6   :  { %v367_v60 = vmul.f32 0.5, %v366_v46  ;;  %v387_v61 = vmul.f32 %v1994_v40, %v376_v55  ;;  %vm650_vm1 = vcmask 1044484   ;;  %vm652_vm2 = vcmask 1045509  }
 0x1c7   :  { %v328_v63 = vsub.f32 1.5, %v327_v56  ;;  %v337_v2 = vmul.f32 0.5, %v336_v58  ;;  %v391_v3 = vmul.f32 %v1994_v40, %v380_v59  ;;  %v1650_v56 = vld [vmem:[%s2539_s2 + $0x38] sm:$0xff]  ;;  %v1649_v58 = vld [vmem:[%s2539_s2 + $0x30] sm:$0xff]  ;;  %vm654_vm3 = vcmask 1046534  }
 0x1c8   :  { %v368_v51 = vsub.f32 1.5, %v367_v60  ;;  %v398_v4 = vadd.f32 %v2000_v45, %v387_v61  ;;  %674 = vmatpush.msrb.mxu3 %v1650_v56  ;;  %vm656_vm4 = vcmask 1047559  }
 0x1c9   :  { %v329_v5 = vmul.f32 %v1748_v37, %v328_v63  ;;  %v338_v6 = vsub.f32 1.5, %v337_v2  ;;  %v402_v1 = vadd.f32 %v2000_v45, %v391_v3 }
 0x1ca   :  { %v369_v0 = vmul.f32 %v1750_v41, %v368_v51  ;;  %v406_v7 = vmax.f32 %v398_v4, 0.0  ;;  %675 = vmatpush.msrb.mxu3 %v1649_v58 }
 0x1cb   :  { %v333_v9 = vsel %vm332_vm6, %v1748_v37, %v329_v5  ;;  %v339_v10 = vmul.f32 %v1752_v47, %v338_v6  ;;  %v410_v11 = vmax.f32 %v402_v1, 0.0 }
 0x1cc   :  { %v373_v15 = vsel %vm372_vm8, %v1750_v41, %v369_v0  ;;  %1641 = vmatmul.msk.f32.gmra.mxu1 %vm133_vm0, %v406_v7  ;;  %v377_v16 = vmul.f32 %v333_v9, %v1959_v12 }
 0x1cd   :  { %v343_v17 = vsel %vm342_vm10, %v1752_v47, %v339_v10  ;;  %1645 = vmatmul.msk.f32.gmra.mxu3 %vm133_vm0, %v410_v11  ;;  %v51_v18 = vpop.permute.xlu1 %50  ;;  %v381_v19 = vmul.f32 %v373_v15, %v1963_v14 }
 0x1ce   :  { %vm52_vm11 = vcmp.ge.s32.totalorder %v48_v8, %v51_v18  ;;  %v388_v62 = vmul.f32 %v1994_v40, %v377_v16  ;;  %v378_v20 = vmul.f32 %v343_v17, %v1961_v13 }
 0x1cf   :  { %v53_v22 = vsel %vm52_vm11, -10000.0, %v1842_v21  ;;  %v392_v23 = vmul.f32 %v1994_v40, %v381_v19 }
 0x1d0   :  { %v75_v24 = vperm.slane %v53_v22, 3  ;;  %v61_v25 = vperm.slane %v53_v22, 1  ;;  %v54_v26 = vperm.slane %v53_v22, 0  ;;  %v399_v12 = vadd.f32 %v2000_v45, %v388_v62 }
 0x1d1   :  { %v403_v27 = vadd.f32 %v2000_v45, %v392_v23  ;;  %v389_v28 = vmul.f32 %v1994_v40, %v378_v20  ;;  %v89_v30 = vperm.slane %v53_v22, 5  ;;  %v68_v31 = vperm.slane %v53_v22, 2 }
 0x1d2   :  { %80 = vperm.xlu1 %1722, %v75_v24   ;;  %66 = vperm.xlu0 %1721, %v61_v25   ;;  %v407_v14 = vmax.f32 %v399_v12, 0.0  ;;  %v103_v33 = vperm.slane %v53_v22, 7  ;;  %v82_v40 = vperm.slane %v53_v22, 4  ;;  %v96_v34 = vperm.slane %v53_v22, 6 }
 0x1d3   :  { %59 = vperm.xlu2 %1720, %v54_v26   ;;  %v411_v29 = vmax.f32 %v403_v27, 0.0  ;;  %v400_v13 = vadd.f32 %v2000_v45, %v389_v28  ;;  %v1648_v45 = vld [vmem:[%s2539_s2 + $0x28] sm:$0xff] }
 0x1d4   :  { %1642 = vmatmul.msk.f32.gmra.mxu1 %vm133_vm0, %v407_v14  ;;  %609 = vmatpush.msrb.mxu0 %v1648_v45 }
 0x1d5   :  { %1646 = vmatmul.msk.f32.gmra.mxu3 %vm133_vm0, %v411_v29  ;;  %v408_v32 = vmax.f32 %v400_v13, 0.0  ;;  %1709 = vmatpush.msra.mxu2 %v1648_v45 }
 0x1d6   :  { %610 = vmatpush.msrb.mxu0 %v1647_v35 }
 0x1d7   :  { %1710 = vmatpush.msra.mxu2 %v1647_v35 }
 0x1da   :  { %94 = vperm.xlu1 %1722, %v89_v30  }
 0x1db   :  { %73 = vperm.xlu2 %1720, %v68_v31  }
 0x1dc   :  { %1643 = vmatmul.msk.f32.gmra.mxu1 %vm133_vm0, %v408_v32 }
 0x1e2   :  { %108 = vperm.xlu1 %1722, %v103_v33  }
 0x1e3   :  { %87 = vperm.xlu2 %1720, %v82_v40  }
 0x1eb   :  { %101 = vperm.xlu2 %1720, %v96_v34  }
 0x219   :  { %v456_v37 = vpop.f32.mrf.mxu1 }
 0x21a   :  { %v457_v38 = vadd.f32 %v1726_v36, %v456_v37 }
 0x21c   :  { %1659 = vmatmul.msk.f32.vlgmr.msrb.gmra.mxu0 %vm488_vm12, %v457_v38 }
 0x221   :  { %v459_v39 = vpop.f32.mrf.mxu1 }
 0x222   :  { %v460_v41 = vadd.f32 %v1726_v36, %v459_v39 }
 0x224   :  { %1660 = vmatmul.msk.f32.gmra.mxu0 %vm488_vm12, %v460_v41 }
 0x22d   :  { %v2057_v42 = vpop.permute.xlu2 %59 }
 0x22e   :  { %v480_v52 = vadd.f32 %v457_v38, %v2057_v42 }
 0x230   :  { %v489_v61 = vsel %vm488_vm12, %v480_v52, -inf }
 0x231   :  { %v490_v4 = vrot.slane %v489_v61, 4 }
 0x233   :  { %v491_v15 = vmax.f32 %v489_v61, %v490_v4 }
 0x235   :  { %v2059_v44 = vpop.permute.xlu2 %73  ;;  %v492_v23 = vrot.slane %v491_v15, 2 }
 0x237   :  { %v493_v33 = vmax.f32 %v491_v15, %v492_v23 }
 0x23d   :  { %v2066_v50 = vpop.permute.xlu2 %87 }
 0x244   :  { %v2061_v47 = vpop.permute.xlu1 %80  ;;  %v2063_v48 = vpop.permute.xlu0 %66 }
 0x245   :  { %v481_v57 = vadd.f32 %v460_v41, %v2063_v48  ;;  %v2089_v8 = vpop.permute.xlu2 %101 }
 0x247   :  { %v471_v49 = vpop.f32.mrf.mxu3  ;;  %v496_v46 = vsel %vm488_vm12, %v481_v57, -inf }
 0x248   :  { %v2070_v55 = vadd.f32 %v1726_v36, %v471_v49  ;;  %v497_v2 = vrot.slane %v496_v46, 4  ;;  %v494_v49 = vrot.slane %v493_v33, 1 }
 0x249   :  { %v462_v53 = vpop.f32.mrf.mxu1 }
 0x24a   :  { %v463_v54 = vadd.f32 %v1726_v36, %v462_v53  ;;  %v498_v7 = vmax.f32 %v496_v46, %v497_v2  ;;  %v495_v2 = vmax.f32 %v493_v33, %v494_v49  ;;  %v2124_v33 = vld [vmem:[%s2540_s3 + $0x1] ss:$0 sm:$0xff] }
 0x24c   :  { %v482_v59 = vadd.f32 %v463_v54, %v2059_v44  ;;  %1661 = vmatmul.msk.f32.gmra.mxu0 %vm488_vm12, %v463_v54  ;;  %v2080_v60 = vpop.permute.xlu1 %94  ;;  %v499_v19 = vrot.slane %v498_v7, 2 }
 0x24d   :  { %v485_v63 = vadd.f32 %v2070_v55, %v2080_v60 }
 0x24e   :  { %v503_v3 = vsel %vm488_vm12, %v482_v59, -inf  ;;  %v500_v14 = vmax.f32 %v498_v7, %v499_v19 }
 0x24f   :  { %v504_v51 = vrot.slane %v503_v3, 4  ;;  %v524_v6 = vsel %vm488_vm12, %v485_v63, -inf }
 0x250   :  { %v474_v5 = vpop.f32.mrf.mxu3  ;;  %v525_v16 = vrot.slane %v524_v6, 4  ;;  %v501_v38 = vrot.slane %v500_v14, 1 }
 0x251   :  { %v2087_v1 = vadd.f32 %v1726_v36, %v474_v5  ;;  %v465_v0 = vpop.f32.mrf.mxu1  ;;  %v505_v10 = vmax.f32 %v503_v3, %v504_v51 }
 0x252   :  { %v466_v9 = vadd.f32 %v1726_v36, %v465_v0  ;;  %v526_v24 = vmax.f32 %v524_v6, %v525_v16  ;;  %v502_v58 = vmax.f32 %v500_v14, %v501_v38 }
 0x253   :  { %v486_v11 = vadd.f32 %v2087_v1, %v2089_v8  ;;  %v506_v21 = vrot.slane %v505_v10, 2 }
 0x254   :  { %v483_v17 = vadd.f32 %v466_v9, %v2061_v47  ;;  %1662 = vmatmul.msk.f32.vlgmr.msra.gmra.mxu2 %vm488_vm12, %v466_v9  ;;  %v2099_v29 = vpop.permute.xlu1 %108  ;;  %v527_v40 = vrot.slane %v526_v24, 2  ;;  %v546_v0 = vmax.f32 %v502_v58, 0.0 }
 0x255   :  { %v531_v18 = vsel %vm488_vm12, %v486_v11, -inf  ;;  %v507_v30 = vmax.f32 %v505_v10, %v506_v21  ;;  %v545_v11 = vmax.f32 %v495_v2, 0.0 }
 0x256   :  { %v532_v62 = vrot.slane %v531_v18, 4  ;;  %v510_v20 = vsel %vm488_vm12, %v483_v17, -inf  ;;  %v528_v52 = vmax.f32 %v526_v24, %v527_v40 }
 0x257   :  { %v511_v22 = vrot.slane %v510_v20, 4  ;;  %v645_v19 = vsel %vm644_vm13, %v546_v0, %v545_v11 }
 0x258   :  { %v477_v25 = vpop.f32.mrf.mxu3  ;;  %v533_v26 = vmax.f32 %v531_v18, %v532_v62  ;;  %v529_v3 = vrot.slane %v528_v52, 1 }
 0x259   :  { %v512_v12 = vmax.f32 %v510_v20, %v511_v22  ;;  %v2097_v27 = vadd.f32 %v1726_v36, %v477_v25  ;;  %v468_v28 = vpop.f32.mrf.mxu1 }
 0x25a   :  { %v469_v13 = vadd.f32 %v1726_v36, %v468_v28  ;;  %v534_v45 = vrot.slane %v533_v26, 2  ;;  %v508_v36 = vrot.slane %v507_v30, 1  ;;  %v530_v15 = vmax.f32 %v528_v52, %v529_v3 }
 0x25b   :  { %v513_v31 = vrot.slane %v512_v12, 2  ;;  %v487_v32 = vadd.f32 %v2097_v27, %v2099_v29 }
 0x25c   :  { %v484_v34 = vadd.f32 %v469_v13, %v2066_v50  ;;  %1663 = vmatmul.msk.f32.gmra.mxu2 %vm488_vm12, %v469_v13  ;;  %v535_v46 = vmax.f32 %v533_v26, %v534_v45  ;;  %v509_v61 = vmax.f32 %v507_v30, %v508_v36  ;;  %v550_v21 = vmax.f32 %v530_v15, 0.0 }
 0x25d   :  { %v514_v35 = vmax.f32 %v512_v12, %v513_v31  ;;  %v538_v37 = vsel %vm488_vm12, %v487_v32, -inf }
 0x25e   :  { %v539_v39 = vrot.slane %v538_v37, 4  ;;  %v517_v41 = vsel %vm488_vm12, %v484_v34, -inf  ;;  %v536_v5 = vrot.slane %v535_v46, 1  ;;  %v547_v9 = vmax.f32 %v509_v61, 0.0 }
 0x25f   :  { %v518_v57 = vrot.slane %v517_v41, 4  ;;  %v515_v53 = vrot.slane %v514_v35, 1 }
 0x260   :  { %v540_v54 = vmax.f32 %v538_v37, %v539_v39  ;;  %v537_v17 = vmax.f32 %v535_v46, %v536_v5 }
 0x261   :  { %v519_v56 = vmax.f32 %v517_v41, %v518_v57  ;;  %v516_v51 = vmax.f32 %v514_v35, %v515_v53 }
 0x262   :  { %v541_v59 = vrot.slane %v540_v54, 2  ;;  %v551_v23 = vmax.f32 %v537_v17, 0.0 }
 0x263   :  { %v520_v63 = vrot.slane %v519_v56, 2  ;;  %v548_v16 = vmax.f32 %v516_v51, 0.0 }
 0x264   :  { %v542_v4 = vmax.f32 %v540_v54, %v541_v59  ;;  %1664 = vmatmul.msk.f32.gmra.mxu2 %vm488_vm12, %v2070_v55  ;;  %v647_v55 = vsel %vm646_vm14, %v547_v9, %v645_v19 }
 0x265   :  { %v521_v6 = vmax.f32 %v519_v56, %v520_v63  ;;  %v649_v22 = vsel %vm648_vm15, %v548_v16, %v647_v55 }
 0x266   :  { %v543_v7 = vrot.slane %v542_v4, 1 }
 0x267   :  { %v522_v10 = vrot.slane %v521_v6, 1 }
 0x268   :  { %v544_v62 = vmax.f32 %v542_v4, %v543_v7 }
 0x269   :  { %v523_v18 = vmax.f32 %v521_v6, %v522_v10 }
 0x26a   :  { %v552_v25 = vmax.f32 %v544_v62, 0.0 }
 0x26b   :  { %v549_v20 = vmax.f32 %v523_v18, 0.0 }
 0x26c   :  { %1665 = vmatmul.msk.f32.gmra.mxu2 %vm488_vm12, %v2087_v1 }
 0x26d   :  { %v651_v24 = vsel %vm650_vm1, %v549_v20, %v649_v22 }
 0x26e   :  { %v653_v26 = vsel %vm652_vm2, %v550_v21, %v651_v24 }
 0x26f   :  { %v655_v12 = vsel %vm654_vm3, %v551_v23, %v653_v26 }
 0x270   :  { %v657_v28 = vsel %vm656_vm4, %v552_v25, %v655_v12 }
 0x271   :  { %1667 = vmatmul.msk.f32.vlgmr.msrb.gmra.mxu3 %vm488_vm12, %v657_v28 }
 0x274   :  { %1666 = vmatmul.msk.f32.gmra.mxu2 %vm488_vm12, %v2097_v27 }
 0x299   :  { %v612_v14 = vpop.f32.mrf.mxu0 }
 0x2a1   :  { %v615_v30 = vpop.f32.mrf.mxu0 }
 0x2c9   :  { %v618_v27 = vpop.f32.mrf.mxu0 }
 0x2d7   :  { %v621_v1 = vpop.f32.mrf.mxu2 }
 0x2df   :  { %v624_v13 = vpop.f32.mrf.mxu2 }
 0x2e7   :  { %v627_v36 = vpop.f32.mrf.mxu2 }
 0x2ef   :  { %v630_v9 = vpop.f32.mrf.mxu2 }
 0x2f4   :  { %v677_v31 = vpop.f32.mrf.mxu3 }
 0x2f5   :  { %v688_v32 = vperm.slane %v677_v31, 0  ;;  %v682_v40 = vrot.slane %v677_v31, 2  ;;  %v681_v34 = vrot.slane %v677_v31, 1  ;;  %v684_v45 = vrot.slane %v677_v31, 4 }
 0x2f6   :  { %v685_v35 = vrot.slane %v677_v31, 5  ;;  %v683_v37 = vrot.slane %v677_v31, 3  ;;  %v686_v56 = vrot.slane %v677_v31, 6  ;;  %v687_v19 = vrot.slane %v677_v31, 7 }
 0x2f7   :  { %v704_v38 = vadd.f32 %v688_v32, %v612_v14  ;;  %v690_v39 = vperm.slane %v682_v40, 0  ;;  %v689_v41 = vperm.slane %v681_v34, 0  ;;  %v692_v57 = vperm.slane %v684_v45, 0  ;;  %v633_v26 = vpop.f32.mrf.mxu2 }
 0x2f8   :  { %v693_v49 = vperm.slane %v685_v35, 0  ;;  %v691_v46 = vperm.slane %v683_v37, 0  ;;  %v694_v6 = vperm.slane %v686_v56, 0  ;;  %v695_v22 = vperm.slane %v687_v19, 0 }
 0x2f9   :  { %v715_v52 = vadd.f32 %v2124_v33, %v704_v38  ;;  %v706_v53 = vadd.f32 %v690_v39, %v618_v27  ;;  %v705_v54 = vadd.f32 %v689_v41, %v615_v30  ;;  %v708_v63 = vadd.f32 %v692_v57, %v624_v13 }
 0x2fa   :  { %v709_v51 = vadd.f32 %v693_v49, %v627_v36  ;;  %v707_v4 = vadd.f32 %v691_v46, %v621_v1  ;;  %v710_v11 = vadd.f32 %v694_v6, %v630_v9  ;;  %v711_v14 = vadd.f32 %v695_v22, %v633_v26  ;;  %v1654_v6 = vld [vmem:[%s2543_s6 + $0x20] sm:$0xff] }
 0x2fb   :  { %v723_v58 = vsel %vm133_vm0, %v715_v52, 0.0  ;;  %v717_v59 = vadd.f32 %v2124_v33, %v706_v53  ;;  %v716_v61 = vadd.f32 %v2124_v33, %v705_v54  ;;  %v719_v5 = vadd.f32 %v2124_v33, %v708_v63 }
 0x2fc   :  { %724 = vadd.xlane.f32.xlu0 %v723_v58  ;;  %v720_v0 = vadd.f32 %v2124_v33, %v709_v51  ;;  %v718_v7 = vadd.f32 %v2124_v33, %v707_v4  ;;  %v721_v17 = vadd.f32 %v2124_v33, %v710_v11  ;;  %v722_v41 = vadd.f32 %v2124_v33, %v711_v14  ;;  %v1656_v51 = vld [vmem:[%s2543_s6 + $0x30] sm:$0xff]  ;;  %v1655_v4 = vld [vmem:[%s2543_s6 + $0x28] sm:$0xff] }
 0x2fd   :  { %v729_v2 = vsel %vm133_vm0, %v717_v59, 0.0  ;;  %v726_v3 = vsel %vm133_vm0, %v716_v61, 0.0  ;;  %v735_v10 = vsel %vm133_vm0, %v719_v5, 0.0 }
 0x2fe   :  { %730 = vadd.xlane.f32.xlu1 %v729_v2  ;;  %727 = vadd.xlane.f32.xlu2 %v726_v3  ;;  %v738_v15 = vsel %vm133_vm0, %v720_v0, 0.0  ;;  %v732_v16 = vsel %vm133_vm0, %v718_v7, 0.0  ;;  %v741_v18 = vsel %vm133_vm0, %v721_v17, 0.0  ;;  %v744_v49 = vsel %vm133_vm0, %v722_v41, 0.0  ;;  %v1657_v3 = vld [vmem:[%s2543_s6 + $0x38] sm:$0xff] }
 0x2ff   :  { %968 = vmatpush.msra.mxu3 %v1657_v3 }
 0x301   :  { %969 = vmatpush.msra.mxu3 %v1656_v51 }
 0x303   :  { %970 = vmatpush.msra.mxu3 %v1655_v4  ;;  %v2234_v4 = vld [vmem:[%s2542_s5 + $0x1] ss:$0 sm:$0xff] }
 0x304   :  { %736 = vadd.xlane.f32.xlu0 %v735_v10 }
 0x305   :  { %971 = vmatpush.msra.mxu3 %v1654_v6 }
 0x306   :  { %739 = vadd.xlane.f32.xlu1 %v738_v15  ;;  %733 = vadd.xlane.f32.xlu2 %v732_v16 }
 0x30c   :  { %742 = vadd.xlane.f32.xlu0 %v741_v18 }
 0x36f   :  { %v725_v62 = vpop.xlane.xlu0 %724 }
 0x370   :  { %v747_v55 = vmul.f32 %v725_v62, %v1924_v43 }
 0x371   :  { %v731_v20 = vpop.xlane.xlu1 %730  ;;  %v728_v21 = vpop.xlane.xlu2 %727 }
 0x372   :  { %v2141_v23 = vsub.f32 %v715_v52, %v747_v55  ;;  %v749_v24 = vmul.f32 %v731_v20, %v1924_v43  ;;  %v748_v25 = vmul.f32 %v728_v21, %v1924_v43 }
 0x374   :  { %v2145_v12 = vsub.f32 %v717_v59, %v749_v24  ;;  %v2147_v28 = vsub.f32 %v716_v61, %v748_v25  ;;  %v763_v1 = vmul.f32 %v2141_v23, %v2141_v23 }
 0x376   :  { %v771_v13 = vsel %vm133_vm0, %v763_v1, 0.0  ;;  %v765_v30 = vmul.f32 %v2145_v12, %v2145_v12  ;;  %v764_v31 = vmul.f32 %v2147_v28, %v2147_v28 }
 0x377   :  { %v737_v32 = vpop.xlane.xlu0 %736  ;;  %772 = vadd.xlane.f32.xlu2 %v771_v13 }
 0x378   :  { %v777_v40 = vsel %vm133_vm0, %v765_v30, 0.0  ;;  %v774_v34 = vsel %vm133_vm0, %v764_v31, 0.0  ;;  %v751_v37 = vmul.f32 %v737_v32, %v1924_v43 }
 0x379   :  { %778 = vadd.xlane.f32.xlu0 %v777_v40  ;;  %v740_v45 = vpop.xlane.xlu1 %739  ;;  %775 = vadd.xlane.f32.xlu1 %v774_v34  ;;  %v734_v35 = vpop.xlane.xlu2 %733 }
 0x37a   :  { %v752_v38 = vmul.f32 %v740_v45, %v1924_v43  ;;  %v750_v39 = vmul.f32 %v734_v35, %v1924_v43  ;;  %v2166_v57 = vsub.f32 %v719_v5, %v751_v37 }
 0x37c   :  { %v2162_v27 = vsub.f32 %v720_v0, %v752_v38  ;;  %v2164_v36 = vsub.f32 %v718_v7, %v750_v39  ;;  %v767_v59 = vmul.f32 %v2166_v57, %v2166_v57 }
 0x37e   :  { %v768_v52 = vmul.f32 %v2162_v27, %v2162_v27  ;;  %v766_v53 = vmul.f32 %v2164_v36, %v2164_v36  ;;  %v783_v63 = vsel %vm133_vm0, %v767_v59, 0.0 }
 0x37f   :  { %v743_v54 = vpop.xlane.xlu0 %742  ;;  %745 = vadd.xlane.f32.xlu2 %v744_v49 }
 0x380   :  { %v753_v46 = vmul.f32 %v743_v54, %v1924_v43  ;;  %v786_v33 = vsel %vm133_vm0, %v768_v52, 0.0  ;;  %v780_v56 = vsel %vm133_vm0, %v766_v53, 0.0 }
 0x381   :  { %787 = vadd.xlane.f32.xlu0 %v786_v33  ;;  %781 = vadd.xlane.f32.xlu1 %v780_v56 }
 0x382   :  { %v2176_v58 = vsub.f32 %v721_v17, %v753_v46  ;;  %v2226_v46 = vld [vmem:[%s2541_s4 + $0x1] ss:$0 sm:$0xff] }
 0x384   :  { %v769_v61 = vmul.f32 %v2176_v58, %v2176_v58 }
 0x386   :  { %v789_v2 = vsel %vm133_vm0, %v769_v61, 0.0 }
 0x387   :  { %784 = vadd.xlane.f32.xlu2 %v783_v63 }
 0x389   :  { %790 = vadd.xlane.f32.xlu1 %v789_v2 }
 0x3ea   :  { %v773_v5 = vpop.xlane.xlu2 %772 }
 0x3eb   :  { %v795_v0 = vmul.f32 %v773_v5, %v1924_v43 }
 0x3ec   :  { %v779_v7 = vpop.xlane.xlu0 %778  ;;  %v776_v9 = vpop.xlane.xlu1 %775 }
 0x3ed   :  { %v803_v10 = vadd.f32 1e-05, %v795_v0  ;;  %v797_v11 = vmul.f32 %v779_v7, %v1924_v43  ;;  %v796_v15 = vmul.f32 %v776_v9, %v1924_v43 }
 0x3ef   :  { %1753 = vrsqrt.f32 %v803_v10  ;;  %v2199_v16 = vadd.f32 1e-05, %v797_v11  ;;  %v804_v17 = vadd.f32 1e-05, %v796_v15  ;;  %vm817_vm6 = vweird.f32 %v803_v10 }
 0x3f1   :  { %1755 = vrsqrt.f32 %v2199_v16  ;;  %vm827_vm9 = vweird.f32 %v804_v17 }
 0x3f2   :  { %1757 = vrsqrt.f32 %v804_v17  ;;  %v746_v18 = vpop.xlane.xlu2 %745 }
 0x3f3   :  { %v754_v19 = vmul.f32 %v746_v18, %v1924_v43 }
 0x3f4   :  { %v782_v62 = vpop.xlane.xlu1 %781  ;;  %v788_v25 = vpop.xlane.xlu0 %787 }
 0x3f5   :  { %v1754_v55 = vpop.eup %1753  ;;  %v2203_v20 = vsub.f32 %v722_v41, %v754_v19  ;;  %v798_v21 = vmul.f32 %v782_v62, %v1924_v43  ;;  %v800_v34 = vmul.f32 %v788_v25, %v1924_v43 }
 0x3f6   :  { %v812_v22 = vmul.f32 %v1754_v55, %v803_v10  ;;  %vm818_vm5 = vweird.f32 %v1754_v55 }
 0x3f7   :  { %v2206_v24 = vpop.eup %1755  ;;  %v2208_v26 = vadd.f32 1e-05, %v798_v21  ;;  %v770_v1 = vmul.f32 %v2203_v20, %v2203_v20  ;;  %v2221_v54 = vadd.f32 1e-05, %v800_v34  ;;  %vm819_vm7 = vmor %vm817_vm6, %vm818_vm5  ;;  %vm837_vm5 = vweird.f32 %v2199_v16 }
 0x3f8   :  { %v1758_v14 = vpop.eup %1757  ;;  %v813_v13 = vmul.f32 %v1754_v55, %v812_v22  ;;  %v832_v30 = vmul.f32 %v2206_v24, %v2199_v16  ;;  %vm838_vm11 = vweird.f32 %v2206_v24 }
 0x3f9   :  { %v822_v31 = vmul.f32 %v1758_v14, %v804_v17  ;;  %1759 = vrsqrt.f32 %v2208_v26  ;;  %v792_v37 = vsel %vm133_vm0, %v770_v1, 0.0  ;;  %vm828_vm8 = vweird.f32 %v1758_v14  ;;  %vm839_vm6 = vmor %vm837_vm5, %vm838_vm11 }
 0x3fa   :  { %v814_v32 = vmul.f32 0.5, %v813_v13  ;;  %v833_v40 = vmul.f32 %v2206_v24, %v832_v30  ;;  %v785_v45 = vpop.xlane.xlu2 %784  ;;  %793 = vadd.xlane.f32.xlu2 %v792_v37  ;;  %vm829_vm10 = vmor %vm827_vm9, %vm828_vm8  ;;  %vm847_vm8 = vweird.f32 %v2208_v26 }
 0x3fb   :  { %v823_v35 = vmul.f32 %v1758_v14, %v822_v31  ;;  %v799_v38 = vmul.f32 %v785_v45, %v1924_v43 }
 0x3fc   :  { %v815_v39 = vsub.f32 1.5, %v814_v32  ;;  %v834_v41 = vmul.f32 0.5, %v833_v40  ;;  %v791_v63 = vpop.xlane.xlu1 %790 }
 0x3fd   :  { %v824_v49 = vmul.f32 0.5, %v823_v35  ;;  %v2219_v52 = vadd.f32 1e-05, %v799_v38  ;;  %v801_v7 = vmul.f32 %v791_v63, %v1924_v43 }
 0x3fe   :  { %v816_v53 = vmul.f32 %v1754_v55, %v815_v39  ;;  %v835_v61 = vsub.f32 1.5, %v834_v41 }
 0x3ff   :  { %v825_v33 = vsub.f32 1.5, %v824_v49  ;;  %1761 = vrsqrt.f32 %v2219_v52  ;;  %v1760_v56 = vpop.eup %1759  ;;  %v809_v18 = vadd.f32 1e-05, %v801_v7  ;;  %vm857_vm11 = vweird.f32 %v2219_v52 }
 0x400   :  { %v820_v59 = vsel %vm819_vm7, %v1754_v55, %v816_v53  ;;  %v842_v51 = vmul.f32 %v1760_v56, %v2208_v26  ;;  %1763 = vrsqrt.f32 %v2221_v54  ;;  %vm848_vm7 = vweird.f32 %v1760_v56 }
 0x401   :  { %v891_v2 = vmul.f32 %v820_v59, %v2141_v23  ;;  %v826_v3 = vmul.f32 %v1758_v14, %v825_v33  ;;  %v836_v23 = vmul.f32 %v2206_v24, %v835_v61  ;;  %1765 = vrsqrt.f32 %v809_v18  ;;  %vm849_vm9 = vmor %vm847_vm8, %vm848_vm7 }
 0x402   :  { %v843_v0 = vmul.f32 %v1760_v56, %v842_v51  ;;  %vm867_vm7 = vweird.f32 %v2221_v54 }
 0x403   :  { %v902_v5 = vmul.f32 %v2226_v46, %v891_v2  ;;  %v830_v6 = vsel %vm829_vm10, %v1758_v14, %v826_v3  ;;  %v840_v21 = vsel %vm839_vm6, %v2206_v24, %v836_v23 }
 0x404   :  { %v892_v9 = vmul.f32 %v830_v6, %v2147_v28  ;;  %v844_v11 = vmul.f32 0.5, %v843_v0  ;;  %v893_v1 = vmul.f32 %v840_v21, %v2145_v12 }
 0x405   :  { %v1762_v10 = vpop.eup %1761  ;;  %v913_v15 = vadd.f32 %v2234_v4, %v902_v5 }
 0x406   :  { %v852_v17 = vmul.f32 %v1762_v10, %v2219_v52  ;;  %v903_v62 = vmul.f32 %v2226_v46, %v892_v9  ;;  %v1764_v55 = vpop.eup %1763  ;;  %v845_v22 = vsub.f32 1.5, %v844_v11  ;;  %v904_v24 = vmul.f32 %v2226_v46, %v893_v1  ;;  %v1677_v11 = vld [vmem:[%s2539_s2 + $0x48] sm:$0xff] }
 0x407   :  { %v921_v19 = vmax.f32 %v913_v15, 0.0  ;;  %v862_v16 = vmul.f32 %v1764_v55, %v2221_v54  ;;  %v1766_v34 = vpop.eup %1765  ;;  %vm858_vm10 = vweird.f32 %v1762_v10  ;;  %vm868_vm6 = vweird.f32 %v1764_v55  ;;  %1125 = vmatpush.msrb.mxu2 %v1677_v11 }
 0x408   :  { %v853_v25 = vmul.f32 %v1762_v10, %v852_v17  ;;  %v914_v28 = vadd.f32 %v2234_v4, %v903_v62  ;;  %v846_v14 = vmul.f32 %v1760_v56, %v845_v22  ;;  %v915_v45 = vadd.f32 %v2234_v4, %v904_v24  ;;  %vm859_vm5 = vmor %vm857_vm11, %vm858_vm10 }
 0x409   :  { %1668 = vmatmul.msk.f32.vlgmr.msra.gmra.mxu3 %vm133_vm0, %v921_v19  ;;  %v863_v31 = vmul.f32 %v1764_v55, %v862_v16  ;;  %v872_v38 = vmul.f32 %v1766_v34, %v809_v18  ;;  %vm869_vm8 = vmor %vm867_vm7, %vm868_vm6  ;;  %vm877_vm10 = vweird.f32 %v809_v18 }
 0x40a   :  { %v854_v13 = vmul.f32 0.5, %v853_v25  ;;  %v922_v30 = vmax.f32 %v914_v28, 0.0  ;;  %v850_v32 = vsel %vm849_vm9, %v1760_v56, %v846_v14  ;;  %v923_v26 = vmax.f32 %v915_v45, 0.0  ;;  %v2286_v14 = vld [vmem:[%s2544_s7 + $0x1] ss:$0 sm:$0xff] }
 0x40b   :  { %v894_v12 = vmul.f32 %v850_v32, %v2164_v36  ;;  %v864_v35 = vmul.f32 0.5, %v863_v31  ;;  %v873_v53 = vmul.f32 %v1766_v34, %v872_v38  ;;  %vm878_vm9 = vweird.f32 %v1766_v34 }
 0x40c   :  { %v855_v40 = vsub.f32 1.5, %v854_v13  ;;  %vm879_vm11 = vmor %vm877_vm10, %vm878_vm9 }
 0x40d   :  { %v905_v39 = vmul.f32 %v2226_v46, %v894_v12  ;;  %v865_v41 = vsub.f32 1.5, %v864_v35  ;;  %v874_v59 = vmul.f32 0.5, %v873_v53 }
 0x40e   :  { %v856_v37 = vmul.f32 %v1762_v10, %v855_v40 }
 0x40f   :  { %v916_v33 = vadd.f32 %v2234_v4, %v905_v39  ;;  %v866_v36 = vmul.f32 %v1764_v55, %v865_v41  ;;  %v875_v2 = vsub.f32 1.5, %v874_v59 }
 0x410   :  { %v860_v49 = vsel %vm859_vm5, %v1762_v10, %v856_v37 }
 0x411   :  { %1669 = vmatmul.msk.f32.gmra.mxu3 %vm133_vm0, %v922_v30  ;;  %v895_v56 = vmul.f32 %v860_v49, %v2166_v57  ;;  %v924_v52 = vmax.f32 %v916_v33, 0.0  ;;  %v870_v63 = vsel %vm869_vm8, %v1764_v55, %v866_v36  ;;  %v876_v5 = vmul.f32 %v1766_v34, %v875_v2 }
 0x412   :  { %v896_v51 = vmul.f32 %v870_v63, %v2162_v27 }
 0x413   :  { %v906_v61 = vmul.f32 %v2226_v46, %v895_v56  ;;  %v880_v54 = vsel %vm879_vm11, %v1766_v34, %v876_v5 }
 0x414   :  { %v907_v6 = vmul.f32 %v2226_v46, %v896_v51  ;;  %v897_v7 = vmul.f32 %v880_v54, %v2176_v58  ;;  %v1676_v58 = vld [vmem:[%s2539_s2 + $0x40] sm:$0xff] }
 0x415   :  { %v917_v3 = vadd.f32 %v2234_v4, %v906_v61  ;;  %1126 = vmatpush.msrb.mxu2 %v1676_v58 }
 0x416   :  { %v918_v0 = vadd.f32 %v2234_v4, %v907_v6  ;;  %v908_v9 = vmul.f32 %v2226_v46, %v897_v7 }
 0x417   :  { %v925_v57 = vmax.f32 %v917_v3, 0.0 }
 0x418   :  { %v926_v23 = vmax.f32 %v918_v0, 0.0  ;;  %v919_v27 = vadd.f32 %v2234_v4, %v908_v9 }
 0x419   :  { %1670 = vmatmul.msk.f32.gmra.mxu3 %vm133_vm0, %v923_v26 }
 0x41a   :  { %v927_v10 = vmax.f32 %v919_v27, 0.0 }
 0x421   :  { %1671 = vmatmul.msk.f32.gmra.mxu3 %vm133_vm0, %v924_v52 }
 0x429   :  { %1672 = vmatmul.msk.f32.gmra.mxu3 %vm133_vm0, %v925_v57 }
 0x431   :  { %1673 = vmatmul.msk.f32.gmra.mxu3 %vm133_vm0, %v926_v23 }
 0x439   :  { %1674 = vmatmul.msk.f32.gmra.mxu3 %vm133_vm0, %v927_v10 }
 0x46d   :  { %v794_v15 = vpop.xlane.xlu2 %793 }
 0x46e   :  { %v802_v17 = vmul.f32 %v794_v15, %v1924_v43 }
 0x470   :  { %v810_v18 = vadd.f32 1e-05, %v802_v17 }
 0x472   :  { %1767 = vrsqrt.f32 %v810_v18  ;;  %vm887_vm6 = vweird.f32 %v810_v18 }
 0x478   :  { %v1768_v19 = vpop.eup %1767 }
 0x479   :  { %v882_v62 = vmul.f32 %v1768_v19, %v810_v18  ;;  %vm888_vm5 = vweird.f32 %v1768_v19 }
 0x47a   :  { %vm889_vm7 = vmor %vm887_vm6, %vm888_vm5 }
 0x47b   :  { %v883_v55 = vmul.f32 %v1768_v19, %v882_v62 }
 0x47d   :  { %v884_v21 = vmul.f32 0.5, %v883_v55 }
 0x47f   :  { %v885_v22 = vsub.f32 1.5, %v884_v21 }
 0x481   :  { %v886_v25 = vmul.f32 %v1768_v19, %v885_v22 }
 0x483   :  { %v890_v28 = vsel %vm889_vm7, %v1768_v19, %v886_v25  ;;  %v1679_v19 = vld [vmem:[%s2539_s2 + $0x58] sm:$0xff] }
 0x484   :  { %v898_v1 = vmul.f32 %v890_v28, %v2203_v20  ;;  %1183 = vmatpush.msra.mxu0 %v1679_v19 }
 0x486   :  { %v909_v16 = vmul.f32 %v2226_v46, %v898_v1 }
 0x488   :  { %v920_v13 = vadd.f32 %v2234_v4, %v909_v16 }
 0x48a   :  { %v928_v24 = vmax.f32 %v920_v13, 0.0 }
 0x48c   :  { %v973_v30 = vpop.f32.mrf.mxu3  ;;  %1675 = vmatmul.msk.f32.gmra.mxu3 %vm133_vm0, %v928_v24 }
 0x48d   :  { %v974_v31 = vadd.f32 %v2286_v14, %v973_v30 }
 0x48f   :  { %v997_v32 = vadd.f32 %v974_v31, %v2057_v42  ;;  %1688 = vmatmul.msk.f32.vlgmr.msrb.gmra.mxu2 %vm488_vm12, %v974_v31 }
 0x491   :  { %v1005_v20 = vsel %vm488_vm12, %v997_v32, -inf }
 0x492   :  { %v1006_v46 = vrot.slane %v1005_v20, 4 }
 0x494   :  { %v1007_v40 = vmax.f32 %v1005_v20, %v1006_v46  ;;  %v976_v34 = vpop.f32.mrf.mxu3 }
 0x495   :  { %v977_v45 = vadd.f32 %v2286_v14, %v976_v34 }
 0x496   :  { %v1008_v12 = vrot.slane %v1007_v40, 2 }
 0x497   :  { %v998_v4 = vadd.f32 %v977_v45, %v2063_v48  ;;  %1689 = vmatmul.msk.f32.gmra.mxu2 %vm488_vm12, %v977_v45 }
 0x498   :  { %v1009_v37 = vmax.f32 %v1007_v40, %v1008_v12 }
 0x499   :  { %v1012_v35 = vsel %vm488_vm12, %v998_v4, -inf }
 0x49a   :  { %v1013_v38 = vrot.slane %v1012_v35, 4  ;;  %v1010_v49 = vrot.slane %v1009_v37, 1 }
 0x49c   :  { %v1014_v26 = vmax.f32 %v1012_v35, %v1013_v38  ;;  %v979_v39 = vpop.f32.mrf.mxu3  ;;  %v1011_v59 = vmax.f32 %v1009_v37, %v1010_v49 }
 0x49d   :  { %v980_v41 = vadd.f32 %v2286_v14, %v979_v39 }
 0x49e   :  { %v1015_v53 = vrot.slane %v1014_v26, 2  ;;  %v1061_v5 = vmax.f32 %v1011_v59, 0.0 }
 0x49f   :  { %v999_v33 = vadd.f32 %v980_v41, %v2059_v44  ;;  %1690 = vmatmul.msk.f32.gmra.mxu2 %vm488_vm12, %v980_v41 }
 0x4a0   :  { %v1016_v56 = vmax.f32 %v1014_v26, %v1015_v53 }
 0x4a1   :  { %v1019_v36 = vsel %vm488_vm12, %v999_v33, -inf }
 0x4a2   :  { %v1017_v52 = vrot.slane %v1016_v56, 1  ;;  %v1020_v61 = vrot.slane %v1019_v36, 4 }
 0x4a4   :  { %v1018_v63 = vmax.f32 %v1016_v56, %v1017_v52  ;;  %v1021_v2 = vmax.f32 %v1019_v36, %v1020_v61  ;;  %v982_v3 = vpop.f32.mrf.mxu3 }
 0x4a5   :  { %v983_v51 = vadd.f32 %v2286_v14, %v982_v3 }
 0x4a6   :  { %v1062_v57 = vmax.f32 %v1018_v63, 0.0  ;;  %v1022_v6 = vrot.slane %v1021_v2, 2 }
 0x4a7   :  { %v1000_v54 = vadd.f32 %v983_v51, %v2061_v47  ;;  %1691 = vmatmul.msk.f32.gmra.mxu2 %vm488_vm12, %v983_v51 }
 0x4a8   :  { %v1160_v0 = vsel %vm644_vm13, %v1062_v57, %v1061_v5  ;;  %v1023_v7 = vmax.f32 %v1021_v2, %v1022_v6  ;;  %v1678_v6 = vld [vmem:[%s2539_s2 + $0x50] sm:$0xff] }
 0x4a9   :  { %v1026_v23 = vsel %vm488_vm12, %v1000_v54, -inf  ;;  %1184 = vmatpush.msra.mxu0 %v1678_v6 }
 0x4aa   :  { %v1024_v9 = vrot.slane %v1023_v7, 1  ;;  %v1027_v27 = vrot.slane %v1026_v23, 4 }
 0x4ac   :  { %v1025_v10 = vmax.f32 %v1023_v7, %v1024_v9  ;;  %v1028_v11 = vmax.f32 %v1026_v23, %v1027_v27  ;;  %v985_v15 = vpop.f32.mrf.mxu3 }
 0x4ad   :  { %v986_v17 = vadd.f32 %v2286_v14, %v985_v15 }
 0x4ae   :  { %v1063_v58 = vmax.f32 %v1025_v10, 0.0  ;;  %v1029_v18 = vrot.slane %v1028_v11, 2 }
 0x4af   :  { %v1001_v62 = vadd.f32 %v986_v17, %v2066_v50  ;;  %1692 = vmatmul.msk.f32.gmra.mxu2 %vm488_vm12, %v986_v17 }
 0x4b0   :  { %v1161_v55 = vsel %vm646_vm14, %v1063_v58, %v1160_v0  ;;  %v1030_v21 = vmax.f32 %v1028_v11, %v1029_v18 }
 0x4b1   :  { %v1033_v22 = vsel %vm488_vm12, %v1001_v62, -inf }
 0x4b2   :  { %v1031_v25 = vrot.slane %v1030_v21, 1  ;;  %v1034_v28 = vrot.slane %v1033_v22, 4 }
 0x4b4   :  { %v1032_v1 = vmax.f32 %v1030_v21, %v1031_v25  ;;  %v1035_v16 = vmax.f32 %v1033_v22, %v1034_v28  ;;  %v988_v13 = vpop.f32.mrf.mxu3 }
 0x4b5   :  { %v989_v30 = vadd.f32 %v2286_v14, %v988_v13 }
 0x4b6   :  { %v1064_v24 = vmax.f32 %v1032_v1, 0.0  ;;  %v1036_v31 = vrot.slane %v1035_v16, 2 }
 0x4b7   :  { %v1002_v32 = vadd.f32 %v989_v30, %v2080_v60  ;;  %1693 = vmatmul.msk.f32.gmra.mxu2 %vm488_vm12, %v989_v30 }
 0x4b8   :  { %v1162_v20 = vsel %vm648_vm15, %v1064_v24, %v1161_v55  ;;  %v1037_v46 = vmax.f32 %v1035_v16, %v1036_v31  ;;  %v1731_v16 = vld [vmem:[%s2540_s3 + $0x2] ss:$0 sm:$0xff] }
 0x4b9   :  { %v1040_v40 = vsel %vm488_vm12, %v1002_v32, -inf }
 0x4ba   :  { %v1038_v34 = vrot.slane %v1037_v46, 1  ;;  %v1041_v45 = vrot.slane %v1040_v40, 4 }
 0x4bc   :  { %v1039_v12 = vmax.f32 %v1037_v46, %v1038_v34  ;;  %v1042_v4 = vmax.f32 %v1040_v40, %v1041_v45  ;;  %v991_v35 = vpop.f32.mrf.mxu3 }
 0x4bd   :  { %v992_v37 = vadd.f32 %v2286_v14, %v991_v35 }
 0x4be   :  { %v1065_v38 = vmax.f32 %v1039_v12, 0.0  ;;  %v1043_v26 = vrot.slane %v1042_v4, 2 }
 0x4bf   :  { %v1003_v39 = vadd.f32 %v992_v37, %v2089_v8  ;;  %1694 = vmatmul.msk.f32.gmra.mxu2 %vm488_vm12, %v992_v37 }
 0x4c0   :  { %v1044_v41 = vmax.f32 %v1042_v4, %v1043_v26  ;;  %v1163_v49 = vsel %vm650_vm1, %v1065_v38, %v1162_v20 }
 0x4c1   :  { %v1047_v53 = vsel %vm488_vm12, %v1003_v39, -inf }
 0x4c2   :  { %v1045_v33 = vrot.slane %v1044_v41, 1  ;;  %v1048_v56 = vrot.slane %v1047_v53, 4 }
 0x4c4   :  { %v1046_v36 = vmax.f32 %v1044_v41, %v1045_v33  ;;  %v1049_v59 = vmax.f32 %v1047_v53, %v1048_v56 }
 0x4c6   :  { %v1066_v52 = vmax.f32 %v1046_v36, 0.0  ;;  %v1050_v61 = vrot.slane %v1049_v59, 2 }
 0x4c8   :  { %v1051_v63 = vmax.f32 %v1049_v59, %v1050_v61  ;;  %v1164_v2 = vsel %vm652_vm2, %v1066_v52, %v1163_v49 }
 0x4ca   :  { %v1052_v3 = vrot.slane %v1051_v63, 1 }
 0x4cc   :  { %v1053_v51 = vmax.f32 %v1051_v63, %v1052_v3 }
 0x4ce   :  { %v1067_v5 = vmax.f32 %v1053_v51, 0.0 }
 0x4d0   :  { %v1165_v57 = vsel %vm654_vm3, %v1067_v5, %v1164_v2 }
 0x50f   :  { %v994_v54 = vpop.f32.mrf.mxu3 }
 0x510   :  { %v995_v0 = vadd.f32 %v2286_v14, %v994_v54 }
 0x512   :  { %v1004_v7 = vadd.f32 %v995_v0, %v2099_v29  ;;  %1695 = vmatmul.msk.f32.gmra.mxu2 %vm488_vm12, %v995_v0  ;;  %v1128_v19 = vpop.f32.mrf.mxu2 }
 0x514   :  { %v1054_v23 = vsel %vm488_vm12, %v1004_v7, -inf }
 0x515   :  { %v1055_v9 = vrot.slane %v1054_v23, 4 }
 0x517   :  { %v1056_v27 = vmax.f32 %v1054_v23, %v1055_v9 }
 0x519   :  { %v1057_v10 = vrot.slane %v1056_v27, 2 }
 0x51a   :  { %v1131_v62 = vpop.f32.mrf.mxu2 }
 0x51b   :  { %v1058_v11 = vmax.f32 %v1056_v27, %v1057_v10 }
 0x51d   :  { %v1059_v15 = vrot.slane %v1058_v11, 1 }
 0x51f   :  { %v1060_v17 = vmax.f32 %v1058_v11, %v1059_v15 }
 0x521   :  { %v1068_v58 = vmax.f32 %v1060_v17, 0.0 }
 0x522   :  { %v1134_v14 = vpop.f32.mrf.mxu2 }
 0x523   :  { %v1166_v18 = vsel %vm656_vm4, %v1068_v58, %v1165_v57 }
 0x524   :  { %1696 = vmatmul.msk.f32.vlgmr.msra.gmra.mxu0 %vm488_vm12, %v1166_v18 }
 0x52a   :  { %v1137_v55 = vpop.f32.mrf.mxu2 }
 0x532   :  { %v1140_v21 = vpop.f32.mrf.mxu2 }
 0x53a   :  { %v1143_v22 = vpop.f32.mrf.mxu2 }
 0x542   :  { %v1146_v25 = vpop.f32.mrf.mxu2 }
 0x595   :  { %v1149_v35 = vpop.f32.mrf.mxu2 }
 0x5a1   :  { %v1186_v28 = vpop.f32.mrf.mxu0 }
 0x5a2   :  { %v1197_v1 = vperm.slane %v1186_v28, 0  ;;  %v1191_v13 = vrot.slane %v1186_v28, 2  ;;  %v1190_v30 = vrot.slane %v1186_v28, 1  ;;  %v1192_v24 = vrot.slane %v1186_v28, 3 }
 0x5a3   :  { %v1194_v31 = vrot.slane %v1186_v28, 5  ;;  %v1193_v32 = vrot.slane %v1186_v28, 4  ;;  %v1196_v20 = vrot.slane %v1186_v28, 7  ;;  %v1195_v36 = vrot.slane %v1186_v28, 6 }
 0x5a4   :  { %v1213_v46 = vadd.f32 %v1197_v1, %v1128_v19  ;;  %v1199_v40 = vperm.slane %v1191_v13, 0  ;;  %v1198_v34 = vperm.slane %v1190_v30, 0  ;;  %v1200_v45 = vperm.slane %v1192_v24, 0 }
 0x5a5   :  { %v1202_v12 = vperm.slane %v1194_v31, 0  ;;  %v1204_v4 = vperm.slane %v1196_v20, 0  ;;  %v1201_v39 = vperm.slane %v1193_v32, 0  ;;  %v1203_v57 = vperm.slane %v1195_v36, 0  ;;  %v1683_v36 = vld [vmem:[%s2543_s6 + $0x40] sm:$0xff] }
 0x5a6   :  { %v1224_v37 = vadd.f32 %v1731_v16, %v1213_v46  ;;  %v1215_v38 = vadd.f32 %v1199_v40, %v1134_v14  ;;  %v1214_v26 = vadd.f32 %v1198_v34, %v1131_v62  ;;  %v1216_v56 = vadd.f32 %v1200_v45, %v1137_v55 }
 0x5a7   :  { %v1220_v41 = vadd.f32 %v1204_v4, %v1149_v35  ;;  %v1218_v63 = vadd.f32 %v1202_v12, %v1143_v22  ;;  %v1217_v2 = vadd.f32 %v1201_v39, %v1140_v21  ;;  %v1219_v7 = vadd.f32 %v1203_v57, %v1146_v25 }
 0x5a8   :  { %v1232_v49 = vsel %vm133_vm0, %v1224_v37, 0.0  ;;  %v1226_v53 = vadd.f32 %v1731_v16, %v1215_v38  ;;  %v1225_v33 = vadd.f32 %v1731_v16, %v1214_v26  ;;  %v1227_v3 = vadd.f32 %v1731_v16, %v1216_v56  ;;  %v1684_v56 = vld [vmem:[%s2543_s6 + $0x48] sm:$0xff] }
 0x5a9   :  { %1233 = vadd.xlane.f32.xlu0 %v1232_v49  ;;  %v2340_v59 = vadd.f32 %v1731_v16, %v1220_v41  ;;  %v1229_v51 = vadd.f32 %v1731_v16, %v1218_v63  ;;  %v1228_v5 = vadd.f32 %v1731_v16, %v1217_v2  ;;  %v1230_v23 = vadd.f32 %v1731_v16, %v1219_v7 }
 0x5aa   :  { %v1238_v52 = vsel %vm133_vm0, %v1226_v53, 0.0  ;;  %v1235_v61 = vsel %vm133_vm0, %v1225_v33, 0.0  ;;  %v1241_v6 = vsel %vm133_vm0, %v1227_v3, 0.0 }
 0x5ab   :  { %1239 = vadd.xlane.f32.xlu2 %v1238_v52  ;;  %1236 = vadd.xlane.f32.xlu1 %v1235_v61  ;;  %v1247_v54 = vsel %vm133_vm0, %v1229_v51, 0.0  ;;  %v1244_v0 = vsel %vm133_vm0, %v1228_v5, 0.0  ;;  %v1250_v9 = vsel %vm133_vm0, %v1230_v23, 0.0  ;;  %v1253_v34 = vsel %vm133_vm0, %v2340_v59, 0.0 }
 0x5b1   :  { %1242 = vadd.xlane.f32.xlu0 %v1241_v6 }
 0x5b3   :  { %1248 = vadd.xlane.f32.xlu2 %v1247_v54  ;;  %1245 = vadd.xlane.f32.xlu1 %v1244_v0 }
 0x5bb   :  { %1251 = vadd.xlane.f32.xlu1 %v1250_v9 }
 0x61c   :  { %v1234_v27 = vpop.xlane.xlu0 %1233 }
 0x61d   :  { %v1256_v10 = vmul.f32 %v1234_v27, %v1924_v43 }
 0x61e   :  { %v1240_v11 = vpop.xlane.xlu2 %1239  ;;  %v1237_v15 = vpop.xlane.xlu1 %1236 }
 0x61f   :  { %v2349_v17 = vsub.f32 %v1224_v37, %v1256_v10  ;;  %v1258_v58 = vmul.f32 %v1240_v11, %v1924_v43  ;;  %v1257_v18 = vmul.f32 %v1237_v15, %v1924_v43 }
 0x621   :  { %v2353_v19 = vsub.f32 %v1226_v53, %v1258_v58  ;;  %v2355_v62 = vsub.f32 %v1225_v33, %v1257_v18  ;;  %v1272_v14 = vmul.f32 %v2349_v17, %v2349_v17  ;;  %v1686_v53 = vld [vmem:[%s2543_s6 + $0x58] sm:$0xff]  ;;  %v1685_v33 = vld [vmem:[%s2543_s6 + $0x50] sm:$0xff] }
 0x622   :  { %1477 = vmatpush.msrb.mxu1 %v1686_v53 }
 0x623   :  { %v1280_v55 = vsel %vm133_vm0, %v1272_v14, 0.0  ;;  %v1274_v21 = vmul.f32 %v2353_v19, %v2353_v19  ;;  %v1273_v22 = vmul.f32 %v2355_v62, %v2355_v62 }
 0x624   :  { %1281 = vadd.xlane.f32.xlu0 %v1280_v55  ;;  %v1243_v25 = vpop.xlane.xlu0 %1242  ;;  %1478 = vmatpush.msrb.mxu1 %v1685_v33 }
 0x625   :  { %v1259_v28 = vmul.f32 %v1243_v25, %v1924_v43  ;;  %v1286_v1 = vsel %vm133_vm0, %v1274_v21, 0.0  ;;  %v1283_v16 = vsel %vm133_vm0, %v1273_v22, 0.0 }
 0x626   :  { %v1249_v13 = vpop.xlane.xlu2 %1248  ;;  %1287 = vadd.xlane.f32.xlu1 %v1286_v1  ;;  %1284 = vadd.xlane.f32.xlu2 %v1283_v16  ;;  %v1246_v30 = vpop.xlane.xlu1 %1245 }
 0x627   :  { %v2367_v24 = vsub.f32 %v1227_v3, %v1259_v28  ;;  %v1261_v31 = vmul.f32 %v1249_v13, %v1924_v43  ;;  %v1260_v32 = vmul.f32 %v1246_v30, %v1924_v43  ;;  %1479 = vmatpush.msrb.mxu1 %v1684_v56  ;;  %v2439_v56 = vld [vmem:[%s2542_s5 + $0x2] ss:$0 sm:$0xff] }
 0x629   :  { %v2371_v20 = vsub.f32 %v1229_v51, %v1261_v31  ;;  %v1275_v46 = vmul.f32 %v2367_v24, %v2367_v24  ;;  %v2375_v40 = vsub.f32 %v1228_v5, %v1260_v32  ;;  %1480 = vmatpush.msrb.mxu1 %v1683_v36 }
 0x62b   :  { %v1277_v45 = vmul.f32 %v2371_v20, %v2371_v20  ;;  %v1289_v4 = vsel %vm133_vm0, %v1275_v46, 0.0  ;;  %v1276_v38 = vmul.f32 %v2375_v40, %v2375_v40 }
 0x62c   :  { %1254 = vadd.xlane.f32.xlu0 %v1253_v34 }
 0x62d   :  { %v1295_v12 = vsel %vm133_vm0, %v1277_v45, 0.0  ;;  %v1292_v39 = vsel %vm133_vm0, %v1276_v38, 0.0 }
 0x62e   :  { %1296 = vadd.xlane.f32.xlu1 %v1295_v12  ;;  %1290 = vadd.xlane.f32.xlu2 %v1289_v4  ;;  %v1252_v35 = vpop.xlane.xlu1 %1251 }
 0x62f   :  { %v1262_v37 = vmul.f32 %v1252_v35, %v1924_v43 }
 0x631   :  { %v2386_v26 = vsub.f32 %v1230_v23, %v1262_v37  ;;  %v2432_v37 = vld [vmem:[%s2541_s4 + $0x2] ss:$0 sm:$0xff] }
 0x633   :  { %v1278_v41 = vmul.f32 %v2386_v26, %v2386_v26 }
 0x634   :  { %1293 = vadd.xlane.f32.xlu0 %v1292_v39 }
 0x635   :  { %v1298_v49 = vsel %vm133_vm0, %v1278_v41, 0.0 }
 0x636   :  { %1299 = vadd.xlane.f32.xlu2 %v1298_v49 }
 0x697   :  { %v1282_v52 = vpop.xlane.xlu0 %1281 }
 0x698   :  { %v1304_v61 = vmul.f32 %v1282_v52, %v1924_v43 }
 0x699   :  { %v1285_v63 = vpop.xlane.xlu2 %1284  ;;  %v1288_v2 = vpop.xlane.xlu1 %1287 }
 0x69a   :  { %v1312_v3 = vadd.f32 1e-05, %v1304_v61  ;;  %v1305_v51 = vmul.f32 %v1285_v63, %v1924_v43  ;;  %v1306_v5 = vmul.f32 %v1288_v2, %v1924_v43 }
 0x69c   :  { %1769 = vrsqrt.f32 %v1312_v3  ;;  %v1313_v57 = vadd.f32 1e-05, %v1305_v51  ;;  %v2407_v6 = vadd.f32 1e-05, %v1306_v5  ;;  %vm1326_vm9 = vweird.f32 %v1312_v3 }
 0x69e   :  { %1771 = vrsqrt.f32 %v1313_v57  ;;  %vm1336_vm5 = vweird.f32 %v1313_v57 }
 0x69f   :  { %1773 = vrsqrt.f32 %v2407_v6  ;;  %v1255_v54 = vpop.xlane.xlu0 %1254 }
 0x6a0   :  { %v1263_v0 = vmul.f32 %v1255_v54, %v1924_v43 }
 0x6a1   :  { %v1291_v7 = vpop.xlane.xlu2 %1290  ;;  %v1297_v21 = vpop.xlane.xlu1 %1296 }
 0x6a2   :  { %v1770_v23 = vpop.eup %1769  ;;  %v2412_v9 = vsub.f32 %v2340_v59, %v1263_v0  ;;  %v1307_v27 = vmul.f32 %v1291_v7, %v1924_v43  ;;  %v1309_v16 = vmul.f32 %v1297_v21, %v1924_v43 }
 0x6a3   :  { %v1321_v10 = vmul.f32 %v1770_v23, %v1312_v3  ;;  %vm1327_vm8 = vweird.f32 %v1770_v23 }
 0x6a4   :  { %v1772_v11 = vpop.eup %1771  ;;  %v2415_v15 = vadd.f32 1e-05, %v1307_v27  ;;  %v1279_v58 = vmul.f32 %v2412_v9, %v2412_v9  ;;  %vm1328_vm11 = vmor %vm1326_vm9, %vm1327_vm8  ;;  %v2426_v35 = vadd.f32 1e-05, %v1309_v16  ;;  %vm1346_vm8 = vweird.f32 %v2407_v6 }
 0x6a5   :  { %v1774_v18 = vpop.eup %1773  ;;  %v1322_v14 = vmul.f32 %v1770_v23, %v1321_v10  ;;  %v1331_v55 = vmul.f32 %v1772_v11, %v1313_v57  ;;  %vm1337_vm10 = vweird.f32 %v1772_v11 }
 0x6a6   :  { %v1341_v22 = vmul.f32 %v1774_v18, %v2407_v6  ;;  %1775 = vrsqrt.f32 %v2415_v15  ;;  %v1301_v13 = vsel %vm133_vm0, %v1279_v58, 0.0  ;;  %vm1338_vm6 = vmor %vm1336_vm5, %vm1337_vm10  ;;  %vm1347_vm7 = vweird.f32 %v1774_v18 }
 0x6a7   :  { %v1323_v25 = vmul.f32 0.5, %v1322_v14  ;;  %v1332_v59 = vmul.f32 %v1772_v11, %v1331_v55  ;;  %v1294_v28 = vpop.xlane.xlu0 %1293  ;;  %1302 = vadd.xlane.f32.xlu0 %v1301_v13  ;;  %vm1348_vm9 = vmor %vm1346_vm8, %vm1347_vm7 }
 0x6a8   :  { %v1342_v1 = vmul.f32 %v1774_v18, %v1341_v22  ;;  %v1308_v30 = vmul.f32 %v1294_v28, %v1924_v43 }
 0x6a9   :  { %v1324_v31 = vsub.f32 1.5, %v1323_v25  ;;  %v1333_v32 = vmul.f32 0.5, %v1332_v59  ;;  %v1300_v53 = vpop.xlane.xlu2 %1299 }
 0x6aa   :  { %v1343_v46 = vmul.f32 0.5, %v1342_v1  ;;  %v2424_v34 = vadd.f32 1e-05, %v1308_v30  ;;  %v1310_v61 = vmul.f32 %v1300_v53, %v1924_v43 }
 0x6ab   :  { %v1325_v45 = vmul.f32 %v1770_v23, %v1324_v31  ;;  %v1334_v12 = vsub.f32 1.5, %v1333_v32 }
 0x6ac   :  { %v1776_v4 = vpop.eup %1775  ;;  %1777 = vrsqrt.f32 %v2424_v34  ;;  %v1344_v41 = vsub.f32 1.5, %v1343_v46  ;;  %v1318_v54 = vadd.f32 1e-05, %v1310_v61  ;;  %vm1366_vm7 = vweird.f32 %v2424_v34 }
 0x6ad   :  { %v1329_v38 = vsel %vm1328_vm11, %v1770_v23, %v1325_v45  ;;  %v1335_v39 = vmul.f32 %v1772_v11, %v1334_v12  ;;  %v1351_v49 = vmul.f32 %v1776_v4, %v2415_v15  ;;  %1779 = vrsqrt.f32 %v2426_v35 }
 0x6ae   :  { %v1400_v33 = vmul.f32 %v1329_v38, %v2349_v17  ;;  %v1345_v3 = vmul.f32 %v1774_v18, %v1344_v41  ;;  %1781 = vrsqrt.f32 %v1318_v54  ;;  %vm1357_vm10 = vweird.f32 %v1776_v4 }
 0x6af   :  { %v1339_v36 = vsel %vm1338_vm6, %v1772_v11, %v1335_v39  ;;  %v1352_v52 = vmul.f32 %v1776_v4, %v1351_v49  ;;  %vm1356_vm11 = vweird.f32 %v2415_v15 }
 0x6b0   :  { %v1411_v63 = vmul.f32 %v2432_v37, %v1400_v33  ;;  %v1401_v2 = vmul.f32 %v1339_v36, %v2355_v62  ;;  %v1349_v23 = vsel %vm1348_vm9, %v1774_v18, %v1345_v3  ;;  %vm1358_vm5 = vmor %vm1356_vm11, %vm1357_vm10  ;;  %vm1376_vm10 = vweird.f32 %v2426_v35 }
 0x6b1   :  { %v1353_v51 = vmul.f32 0.5, %v1352_v52  ;;  %v1402_v58 = vmul.f32 %v1349_v23, %v2353_v19 }
 0x6b2   :  { %v1778_v17 = vpop.eup %1777  ;;  %v1422_v5 = vadd.f32 %v2439_v56, %v1411_v63  ;;  %v1412_v7 = vmul.f32 %v2432_v37, %v1401_v2 }
 0x6b3   :  { %v1361_v57 = vmul.f32 %v1778_v17, %v2424_v34  ;;  %v1354_v27 = vsub.f32 1.5, %v1353_v51  ;;  %v1780_v11 = vpop.eup %1779  ;;  %v1413_v18 = vmul.f32 %v2432_v37, %v1402_v58  ;;  %vm1367_vm6 = vweird.f32 %v1778_v17 }
 0x6b4   :  { %v1430_v0 = vmax.f32 %v1422_v5, 0.0  ;;  %v1423_v62 = vadd.f32 %v2439_v56, %v1412_v7  ;;  %v1371_v6 = vmul.f32 %v1780_v11, %v2426_v35  ;;  %v1782_v28 = vpop.eup %1781  ;;  %vm1368_vm8 = vmor %vm1366_vm7, %vm1367_vm6  ;;  %vm1377_vm9 = vweird.f32 %v1780_v11 }
 0x6b5   :  { %v1362_v10 = vmul.f32 %v1778_v17, %v1361_v57  ;;  %v1355_v14 = vmul.f32 %v1776_v4, %v1354_v27  ;;  %v1424_v1 = vadd.f32 %v2439_v56, %v1413_v18  ;;  %v1381_v30 = vmul.f32 %v1782_v28, %v1318_v54  ;;  %vm1378_vm11 = vmor %vm1376_vm10, %vm1377_vm9 }
 0x6b6   :  { %1697 = vmatmul.msk.f32.vlgmr.msrb.gmra.mxu1 %vm133_vm0, %v1430_v0  ;;  %v1431_v21 = vmax.f32 %v1423_v62, 0.0  ;;  %v1372_v25 = vmul.f32 %v1780_v11, %v1371_v6  ;;  %vm1386_vm6 = vweird.f32 %v1318_v54 }
 0x6b7   :  { %v1363_v55 = vmul.f32 0.5, %v1362_v10  ;;  %v1359_v22 = vsel %vm1358_vm5, %v1776_v4, %v1355_v14  ;;  %v1432_v15 = vmax.f32 %v1424_v1, 0.0  ;;  %v1382_v45 = vmul.f32 %v1782_v28, %v1381_v30  ;;  %v2480_v10 = vld [vmem:[%s2544_s7 + $0x2] ss:$0 sm:$0xff]  ;;  %s1843_s7 = smov 16  }
 0x6b8   :  { %v1403_v19 = vmul.f32 %v1359_v22, %v2367_v24  ;;  %v1373_v16 = vmul.f32 0.5, %v1372_v25  ;;  %vm1387_vm5 = vweird.f32 %v1782_v28 }
 0x6b9   :  { %v1364_v59 = vsub.f32 1.5, %v1363_v55  ;;  %v1383_v38 = vmul.f32 0.5, %v1382_v45  ;;  %vm1388_vm7 = vmor %vm1386_vm6, %vm1387_vm5 }
 0x6ba   :  { %v1414_v31 = vmul.f32 %v2432_v37, %v1403_v19  ;;  %v1374_v32 = vsub.f32 1.5, %v1373_v16 }
 0x6bb   :  { %v1365_v13 = vmul.f32 %v1778_v17, %v1364_v59  ;;  %v1384_v49 = vsub.f32 1.5, %v1383_v38 }
 0x6bc   :  { %v1425_v12 = vadd.f32 %v2439_v56, %v1414_v31  ;;  %v1375_v24 = vmul.f32 %v1780_v11, %v1374_v32 }
 0x6bd   :  { %v1369_v46 = vsel %vm1368_vm8, %v1778_v17, %v1365_v13  ;;  %v1385_v36 = vmul.f32 %v1782_v28, %v1384_v49 }
 0x6be   :  { %1698 = vmatmul.msk.f32.gmra.mxu1 %vm133_vm0, %v1431_v21  ;;  %v1404_v4 = vmul.f32 %v1369_v46, %v2375_v40  ;;  %v1433_v34 = vmax.f32 %v1425_v12, 0.0  ;;  %v1379_v41 = vsel %vm1378_vm11, %v1780_v11, %v1375_v24 }
 0x6bf   :  { %v1405_v33 = vmul.f32 %v1379_v41, %v2371_v20  ;;  %v1389_v35 = vsel %vm1388_vm7, %v1782_v28, %v1385_v36 }
 0x6c0   :  { %v1415_v39 = vmul.f32 %v2432_v37, %v1404_v4  ;;  %v1406_v63 = vmul.f32 %v1389_v35, %v2386_v26 }
 0x6c1   :  { %v1416_v52 = vmul.f32 %v2432_v37, %v1405_v33 }
 0x6c2   :  { %v1426_v53 = vadd.f32 %v2439_v56, %v1415_v39  ;;  %v1417_v3 = vmul.f32 %v2432_v37, %v1406_v63 }
 0x6c3   :  { %v1427_v61 = vadd.f32 %v2439_v56, %v1416_v52 }
 0x6c4   :  { %v1434_v40 = vmax.f32 %v1426_v53, 0.0  ;;  %v1428_v20 = vadd.f32 %v2439_v56, %v1417_v3 }
 0x6c5   :  { %v1435_v2 = vmax.f32 %v1427_v61, 0.0 }
 0x6c6   :  { %1699 = vmatmul.msk.f32.gmra.mxu1 %vm133_vm0, %v1432_v15  ;;  %v1436_v51 = vmax.f32 %v1428_v20, 0.0 }
 0x6ce   :  { %1700 = vmatmul.msk.f32.gmra.mxu1 %vm133_vm0, %v1433_v34 }
 0x6d6   :  { %1701 = vmatmul.msk.f32.gmra.mxu1 %vm133_vm0, %v1434_v40 }
 0x6de   :  { %1702 = vmatmul.msk.f32.gmra.mxu1 %vm133_vm0, %v1435_v2 }
 0x6e6   :  { %1703 = vmatmul.msk.f32.gmra.mxu1 %vm133_vm0, %v1436_v51 }
 0x71a   :  { %v1303_v17 = vpop.xlane.xlu0 %1302 }
 0x71b   :  { %v1311_v5 = vmul.f32 %v1303_v17, %v1924_v43 }
 0x71d   :  { %v1319_v57 = vadd.f32 1e-05, %v1311_v5 }
 0x71f   :  { %1783 = vrsqrt.f32 %v1319_v57  ;;  %vm1396_vm9 = vweird.f32 %v1319_v57 }
 0x725   :  { %v1784_v54 = vpop.eup %1783 }
 0x726   :  { %v1391_v0 = vmul.f32 %v1784_v54, %v1319_v57  ;;  %vm1397_vm8 = vweird.f32 %v1784_v54 }
 0x727   :  { %vm1398_vm10 = vmor %vm1396_vm9, %vm1397_vm8 }
 0x728   :  { %v1392_v7 = vmul.f32 %v1784_v54, %v1391_v0 }
 0x72a   :  { %v1393_v23 = vmul.f32 0.5, %v1392_v7 }
 0x72c   :  { %v1394_v26 = vsub.f32 1.5, %v1393_v23 }
 0x72e   :  { %v1395_v27 = vmul.f32 %v1784_v54, %v1394_v26 }
 0x730   :  { %v1399_v11 = vsel %vm1398_vm10, %v1784_v54, %v1395_v27 }
 0x731   :  { %v1407_v43 = vmul.f32 %v1399_v11, %v2412_v9 }
 0x733   :  { %v1482_v62 = vpop.f32.mrf.mxu1  ;;  %v1418_v14 = vmul.f32 %v2432_v37, %v1407_v43 }
 0x734   :  { %v1483_v58 = vadd.f32 %v2480_v10, %v1482_v62 }
 0x735   :  { %v1429_v55 = vadd.f32 %v2439_v56, %v1418_v14 }
 0x736   :  { %v1506_v6 = vadd.f32 %v1483_v58, %v2057_v42 }
 0x737   :  { %v1437_v22 = vmax.f32 %v1429_v55, 0.0 }
 0x738   :  { %v1514_v21 = vsel %vm488_vm12, %v1506_v6, -inf }
 0x739   :  { %v1515_v18 = vrot.slane %v1514_v21, 4  ;;  %1704 = vmatmul.msk.f32.gmra.mxu1 %vm133_vm0, %v1437_v22 }
 0x73b   :  { %v1516_v25 = vmax.f32 %v1514_v21, %v1515_v18  ;;  %v1485_v59 = vpop.f32.mrf.mxu1 }
 0x73c   :  { %v1486_v28 = vadd.f32 %v2480_v10, %v1485_v59 }
 0x73d   :  { %v1517_v1 = vrot.slane %v1516_v25, 2 }
 0x73e   :  { %v1507_v9 = vadd.f32 %v1486_v28, %v2063_v48 }
 0x73f   :  { %v1518_v16 = vmax.f32 %v1516_v25, %v1517_v1 }
 0x740   :  { %v1521_v19 = vsel %vm488_vm12, %v1507_v9, -inf }
 0x741   :  { %v1522_v37 = vrot.slane %v1521_v19, 4  ;;  %v1519_v31 = vrot.slane %v1518_v16, 1 }
 0x743   :  { %v1523_v42 = vmax.f32 %v1521_v19, %v1522_v37  ;;  %v1488_v13 = vpop.f32.mrf.mxu1  ;;  %v2495_v4 = vmax.f32 %v1518_v16, %v1519_v31 }
 0x744   :  { %v1489_v56 = vadd.f32 %v2480_v10, %v1488_v13 }
 0x745   :  { %v1524_v30 = vrot.slane %v1523_v42, 2 }
 0x746   :  { %v1508_v15 = vadd.f32 %v1489_v56, %v2059_v44 }
 0x747   :  { %v1525_v32 = vmax.f32 %v1523_v42, %v1524_v30 }
 0x748   :  { %v1528_v46 = vsel %vm488_vm12, %v1508_v15, -inf }
 0x749   :  { %v1526_v45 = vrot.slane %v1525_v32, 1  ;;  %v1529_v12 = vrot.slane %v1528_v46, 4 }
 0x74b   :  { %v2497_v48 = vmax.f32 %v1525_v32, %v1526_v45  ;;  %v1530_v24 = vmax.f32 %v1528_v46, %v1529_v12  ;;  %v1491_v38 = vpop.f32.mrf.mxu1 }
 0x74c   :  { %v1492_v34 = vadd.f32 %v2480_v10, %v1491_v38 }
 0x74d   :  { %v1586_v39 = vsel %vm644_vm13, %v2497_v48, %v2495_v4  ;;  %v1531_v41 = vrot.slane %v1530_v24, 2  ;;  %v1571_v46 = vmax.f32 %v2497_v48, 0.0 }
 0x74e   :  { %v1509_v44 = vadd.f32 %v1492_v34, %v2061_v47 }
 0x74f   :  { %v1532_v49 = vmax.f32 %v1530_v24, %v1531_v41  ;;  %v1570_v24 = vmax.f32 %v2495_v4, 0.0 }
 0x750   :  { %v1535_v53 = vsel %vm488_vm12, %v1509_v44, -inf }
 0x751   :  { %v1533_v33 = vrot.slane %v1532_v49, 1  ;;  %v1536_v36 = vrot.slane %v1535_v53, 4 }
 0x753   :  { %v1534_v40 = vmax.f32 %v1532_v49, %v1533_v33  ;;  %v1537_v52 = vmax.f32 %v1535_v53, %v1536_v36  ;;  %v1494_v35 = vpop.f32.mrf.mxu1  ;;  %v1602_v49 = vsel %vm644_vm13, %v1571_v46, %v1570_v24 }
 0x754   :  { %v1495_v61 = vadd.f32 %v2480_v10, %v1494_v35 }
 0x755   :  { %v1587_v63 = vsel %vm646_vm14, %v1534_v40, %v1586_v39  ;;  %v1538_v2 = vrot.slane %v1537_v52, 2  ;;  %v1572_v12 = vmax.f32 %v1534_v40, 0.0 }
 0x756   :  { %v1510_v3 = vadd.f32 %v1495_v61, %v2066_v50 }
 0x757   :  { %v1539_v20 = vmax.f32 %v1537_v52, %v1538_v2 }
 0x758   :  { %v1542_v51 = vsel %vm488_vm12, %v1510_v3, -inf }
 0x759   :  { %v1540_v17 = vrot.slane %v1539_v20, 1  ;;  %v1543_v47 = vrot.slane %v1542_v51, 4 }
 0x75b   :  { %v1541_v5 = vmax.f32 %v1539_v20, %v1540_v17  ;;  %v1544_v57 = vmax.f32 %v1542_v51, %v1543_v47  ;;  %v1497_v54 = vpop.f32.mrf.mxu1 }
 0x75c   :  { %v1498_v0 = vadd.f32 %v2480_v10, %v1497_v54 }
 0x75d   :  { %v1545_v7 = vrot.slane %v1544_v57, 2  ;;  %v1588_v23 = vsel %vm648_vm15, %v1541_v5, %v1587_v63  ;;  %v1573_v38 = vmax.f32 %v1541_v5, 0.0 }
 0x75e   :  { %v1511_v26 = vadd.f32 %v1498_v0, %v2080_v60 }
 0x75f   :  { %v1546_v27 = vmax.f32 %v1544_v57, %v1545_v7 }
 0x760   :  { %v1549_v11 = vsel %vm488_vm12, %v1511_v26, -inf }
 0x761   :  { %v1547_v62 = vrot.slane %v1546_v27, 1  ;;  %v1550_v50 = vrot.slane %v1549_v11, 4 }
 0x763   :  { %v1548_v43 = vmax.f32 %v1546_v27, %v1547_v62  ;;  %v1551_v58 = vmax.f32 %v1549_v11, %v1550_v50  ;;  %v1500_v14 = vpop.f32.mrf.mxu1 }
 0x764   :  { %v1501_v6 = vadd.f32 %v2480_v10, %v1500_v14 }
 0x765   :  { %v1552_v55 = vrot.slane %v1551_v58, 2  ;;  %v1589_v21 = vsel %vm650_vm1, %v1548_v43, %v1588_v23  ;;  %v1574_v39 = vmax.f32 %v1548_v43, 0.0 }
 0x766   :  { %v1512_v18 = vadd.f32 %v1501_v6, %v2089_v8 }
 0x767   :  { %v1553_v22 = vmax.f32 %v1551_v58, %v1552_v55 }
 0x768   :  { %v1556_v25 = vsel %vm488_vm12, %v1512_v18, -inf }
 0x769   :  { %v1554_v59 = vrot.slane %v1553_v22, 1  ;;  %v1557_v60 = vrot.slane %v1556_v25, 4 }
 0x76b   :  { %v1555_v28 = vmax.f32 %v1553_v22, %v1554_v59  ;;  %v1558_v9 = vmax.f32 %v1556_v25, %v1557_v60 }
 0x76d   :  { %v1559_v1 = vrot.slane %v1558_v9, 2  ;;  %v1590_v19 = vsel %vm652_vm2, %v1555_v28, %v1589_v21  ;;  %v1575_v44 = vmax.f32 %v1555_v28, 0.0 }
 0x76f   :  { %v1560_v37 = vmax.f32 %v1558_v9, %v1559_v1 }
 0x771   :  { %v1561_v16 = vrot.slane %v1560_v37, 1 }
 0x773   :  { %v1562_v42 = vmax.f32 %v1560_v37, %v1561_v16 }
 0x775   :  { %v1591_v13 = vsel %vm654_vm3, %v1562_v42, %v1590_v19 }
 0x7b6   :  { %v1503_v56 = vpop.f32.mrf.mxu1 }
 0x7b7   :  { %v1504_v30 = vadd.f32 %v2480_v10, %v1503_v56  ;;  %v1576_v10 = vmax.f32 %v1562_v42, 0.0 }
 0x7b9   :  { %v1513_v8 = vadd.f32 %v1504_v30, %v2099_v29  ;;  %v1603_v29 = vsel %vm646_vm14, %v1572_v12, %v1602_v49 }
 0x7ba   :  { %v1604_v33 = vsel %vm648_vm15, %v1573_v38, %v1603_v29 }
 0x7bb   :  { %v1563_v15 = vsel %vm488_vm12, %v1513_v8, -inf  ;;  %v1605_v36 = vsel %vm650_vm1, %v1574_v39, %v1604_v33 }
 0x7bc   :  { %v1564_v31 = vrot.slane %v1563_v15, 4  ;;  %v1606_v40 = vsel %vm652_vm2, %v1575_v44, %v1605_v36 }
 0x7bd   :  { %v1607_v52 = vsel %vm654_vm3, %v1576_v10, %v1606_v40 }
 0x7be   :  { %v1565_v32 = vmax.f32 %v1563_v15, %v1564_v31 }
 0x7c0   :  { %v1566_v45 = vrot.slane %v1565_v32, 2 }
 0x7c2   :  { %v1567_v34 = vmax.f32 %v1565_v32, %v1566_v45 }
 0x7c4   :  { %v1568_v41 = vrot.slane %v1567_v34, 1 }
 0x7c6   :  { %v1569_v53 = vmax.f32 %v1567_v34, %v1568_v41 }
 0x7c8   :  { %v1577_v48 = vmax.f32 %v1569_v53, 0.0  ;;  %v1592_v4 = vsel %vm656_vm4, %v1569_v53, %v1591_v13 }
 0x7ca   :  { %v1608_v35 = vsel %vm656_vm4, %v1577_v48, %v1607_v52 }
 0x7cb   :  { %1609 = vrot.lane.b32.xlu1 %v1608_v35, %s1843_s7 }
 0x83d   :  { %v1610_v61 = vpop.permute.xlu1 %1609 }
 0x83e   :  { %v1612_v63 = vsel %vm488_vm12, %v1592_v4, %v1610_v61 }
 0x83f   :  { %1613 = vst.msk [vmem:[#allocation5] sm:$0xff] %vm133_vm0, %v1612_v63 }
 0x840   :  { %1624 = dma.vmem_to_hbm [thread:$0]  %s1620_s10, 128, %s1622_s13, [#allocation4]  }
 0x841   :  { %1835 = dma.done.wait [#allocation4], 128  }
 0x842   :  { %1836 = vsyncadd [#allocation4], 4294967168 }
 0x843   :  { %1629 = vsyncpa [#allocation3], 1 }
 0x844   :  { %1630 = vsyncpa [#allocation4], 1 }

</bundles_post_ra>
